<compile_context>
chip_gen: v7x
topology: tpu7x:2x2x1
jax: 0.10.0
libtpu: 0.0.40
codegen_flags: <defaults>
</compile_context>

<pallas_src>
import jax
import jax.numpy as jnp
from jax import lax
from jax.experimental import pallas as pl
from jax.experimental.pallas import tpu as pltpu


# --------------------------------------------------------------------------- #
# Kernel 1: sequential LSTM recurrence (time-chunked)                          #
# --------------------------------------------------------------------------- #
def lstm_chunk_kernel(x_ref, wih_ref, whh_ref, b_ref, h_out_ref, h_sc, c_sc):
    """One chunk of Tc LSTM steps.

    x_ref     : (Tc, B, E)  bf16  time-major inputs for this chunk
    wih_ref   : (E, 4H)     bf16  W_ih^T (gate order i, f, g, o)
    whh_ref   : (H, 4H)     bf16  W_hh^T
    b_ref     : (1, 4H)     f32   b_ih + b_hh
    h_out_ref : (B, Tc, H)  bf16  hidden states, written batch-first
    h_sc,c_sc : (B, H)      f32   LSTM state carried across grid steps
    """
    @pl.when(pl.program_id(0) == 0)
    def _():
        h_sc[...] = jnp.zeros_like(h_sc)
        c_sc[...] = jnp.zeros_like(c_sc)

    hidden = h_sc.shape[-1]
    t_chunk = x_ref.shape[0]
    bias = b_ref[...]                       # (1, 4H) f32

    h = h_sc[...]                           # (B, H) f32
    c = c_sc[...]                           # (B, H) f32

    # Static unrolled inner loop over the chunk (Tc is a small compile-time const).
    for i in range(t_chunk):
        x_i = x_ref[i]                      # (B, E) bf16
        gates = (
            jnp.dot(x_i, wih_ref[...], preferred_element_type=jnp.float32)
            + jnp.dot(h.astype(jnp.bfloat16), whh_ref[...],
                      preferred_element_type=jnp.float32)
            + bias
        )                                   # (B, 4H) f32

        # PyTorch nn.LSTM gate ordering: input, forget, cell(g), output.
        i_g = jax.nn.sigmoid(gates[:, 0 * hidden:1 * hidden])
        f_g = jax.nn.sigmoid(gates[:, 1 * hidden:2 * hidden])
        g_g = jnp.tanh(gates[:, 2 * hidden:3 * hidden])
        o_g = jax.nn.sigmoid(gates[:, 3 * hidden:4 * hidden])

        c = f_g * c + i_g * g_g
        h = o_g * jnp.tanh(c)

        h_out_ref[:, i, :] = h.astype(h_out_ref.dtype)

    h_sc[...] = h
    c_sc[...] = c


# --------------------------------------------------------------------------- #
# Kernel 2: fully parallel vocab projection GEMM                               #
# --------------------------------------------------------------------------- #
def fc_kernel(h_ref, w_ref, b_ref, o_ref):
    """o = h @ W_fc^T + b_fc  on one (Mt, Vt) tile.

    h_ref : (Mt, H)  bf16
    w_ref : (H, Vt)  bf16
    b_ref : (1, Vt)  f32
    o_ref : (Mt, Vt) f32
    """
    acc = jnp.dot(h_ref[...], w_ref[...], preferred_element_type=jnp.float32)
    o_ref[...] = (acc + b_ref[...]).astype(o_ref.dtype)


# --------------------------------------------------------------------------- #
# Wrapper                                                                      #
# --------------------------------------------------------------------------- #
def _pick_tile(dim, target, align):
    """Largest tile <= target that is a multiple of `align` and divides `dim`;
    falls back to the full dim (always a legal BlockSpec block size)."""
    if dim <= target:
        return dim
    t = (target // align) * align
    while t >= align:
        if dim % t == 0:
            return t
        t -= align
    return dim


def decoder_rnn_forward(features, captions, params):
    """DecoderRNN.forward:
        captions = captions[:, :-1]
        inputs   = cat(features.unsqueeze(1), embed(captions), dim=1)   # (B, T, E)
        outputs, _ = lstm(inputs)
        outputs  = fc_linear(outputs)                                   # (B, T, V)
    """
    emb = params["embedding"]          # (V, E)
    w_ih = params["w_ih"]              # (4H, E)
    w_hh = params["w_hh"]              # (4H, H)
    b_ih = params["b_ih"]              # (4H,)
    b_hh = params["b_hh"]              # (4H,)
    w_fc = params["w_fc"]              # (V, H)
    b_fc = params["b_fc"]              # (V,)

    B, E = features.shape
    H = w_hh.shape[1]
    V = w_fc.shape[0]

    # --- glue (plain JAX): build time-major inputs directly, no float transpose
    cap = captions[:, :-1]                                   # (B, S-1)
    cap_emb_tm = jnp.take(emb, cap.T, axis=0)                # (S-1, B, E)
    x_tm = jnp.concatenate([features[None, :, :], cap_emb_tm], axis=0)  # (T, B, E)
    T = x_tm.shape[0]
    x_tm = x_tm.astype(jnp.bfloat16)

    # --- time chunking (amortize per-grid-step overhead) ----------------------
    t_chunk = min(T, 8)
    t_pad = pl.cdiv(T, t_chunk) * t_chunk
    if t_pad != T:
        x_tm = jnp.pad(x_tm, ((0, t_pad - T), (0, 0), (0, 0)))

    # --- pre-transposed bf16 weights ------------------------------------------
    wih_t = jnp.transpose(w_ih).astype(jnp.bfloat16)          # (E, 4H)
    whh_t = jnp.transpose(w_hh).astype(jnp.bfloat16)          # (H, 4H)
    bias = (b_ih + b_hh).reshape(1, 4 * H).astype(jnp.float32)

    lstm_cost = pl.CostEstimate(
        flops=int(t_pad * (2 * B * E * 4 * H + 2 * B * H * 4 * H + 12 * B * H)),
        transcendentals=int(t_pad * 5 * B * H),
        bytes_accessed=int(t_pad * B * E * 2 + (E + H) * 4 * H * 2
                           + 4 * H * 4 + B * t_pad * H * 2),
    )

    # --- Pallas call 1: sequential LSTM recurrence -----------------------------
    h_bf = pl.pallas_call(
        lstm_chunk_kernel,
        out_shape=jax.ShapeDtypeStruct((B, t_pad, H), jnp.bfloat16),
        grid_spec=pltpu.PrefetchScalarGridSpec(
            num_scalar_prefetch=0,
            grid=(t_pad // t_chunk,),
            in_specs=[
                pl.BlockSpec((t_chunk, B, E), lambda t: (t, 0, 0)),   # x chunk
                pl.BlockSpec((E, 4 * H), lambda t: (0, 0)),           # W_ih^T (resident)
                pl.BlockSpec((H, 4 * H), lambda t: (0, 0)),           # W_hh^T (resident)
                pl.BlockSpec((1, 4 * H), lambda t: (0, 0)),           # bias
            ],
            out_specs=pl.BlockSpec((B, t_chunk, H), lambda t: (0, t, 0)),
            scratch_shapes=[
                pltpu.VMEM((B, H), jnp.float32),   # h state (f32)
                pltpu.VMEM((B, H), jnp.float32),   # c state (f32)
            ],
        ),
        compiler_params=pltpu.CompilerParams(
            dimension_semantics=("arbitrary",),     # sequential recurrence
        ),
        cost_estimate=lstm_cost,
    )(x_tm, wih_t, whh_t, bias)

    h_bf = h_bf[:, :T, :]                           # drop padded time steps

    # --- Pallas call 2: one big parallel GEMM for the vocab projection ---------
    M = B * T
    h_flat = h_bf.reshape(M, H)                     # free leading-dim reshape
    wfc_t = jnp.transpose(w_fc).astype(jnp.bfloat16)  # (H, V)
    bfc = b_fc.reshape(1, V).astype(jnp.float32)

    m_tile = _pick_tile(M, 512, 8)
    v_tile = _pick_tile(V, 1024, 128)

    fc_cost = pl.CostEstimate(
        flops=int(2 * M * H * V),
        transcendentals=0,
        bytes_accessed=int(M * H * 2 + H * V * 2 + V * 4 + M * V * 4),
    )

    logits_flat = pl.pallas_call(
        fc_kernel,
        out_shape=jax.ShapeDtypeStruct((M, V), jnp.float32),
        grid_spec=pltpu.PrefetchScalarGridSpec(
            num_scalar_prefetch=0,
            grid=(M // m_tile, V // v_tile),
            in_specs=[
                pl.BlockSpec((m_tile, H), lambda i, j: (i, 0)),
                pl.BlockSpec((H, v_tile), lambda i, j: (0, j)),
                pl.BlockSpec((1, v_tile), lambda i, j: (0, j)),
            ],
            out_specs=pl.BlockSpec((m_tile, v_tile), lambda i, j: (i, j)),
        ),
        compiler_params=pltpu.CompilerParams(
            dimension_semantics=("parallel", "parallel"),   # megacore-shardable
        ),
        cost_estimate=fc_cost,
    )(h_flat, wfc_t, bfc)

    return logits_flat.reshape(B, T, V)             # free leading-dim reshape


# --------------------------------------------------------------------------- #
# Pure-JAX f32 reference (for a correctness sanity check)                      #
# --------------------------------------------------------------------------- #
def decoder_rnn_reference(features, captions, params):
    emb, w_ih, w_hh = params["embedding"], params["w_ih"], params["w_hh"]
    b_ih, b_hh, w_fc, b_fc = params["b_ih"], params["b_hh"], params["w_fc"], params["b_fc"]
    B = features.shape[0]
    H = w_hh.shape[1]

    cap = captions[:, :-1]
    cap_emb = jnp.take(emb, cap, axis=0)                          # (B, S-1, E)
    inputs = jnp.concatenate([features[:, None, :], cap_emb], axis=1)  # (B, T, E)

    def step(carry, x_t):
        h, c = carry
        gates = x_t @ w_ih.T + h @ w_hh.T + b_ih + b_hh
        i_g = jax.nn.sigmoid(gates[:, 0 * H:1 * H])
        f_g = jax.nn.sigmoid(gates[:, 1 * H:2 * H])
        g_g = jnp.tanh(gates[:, 2 * H:3 * H])
        o_g = jax.nn.sigmoid(gates[:, 3 * H:4 * H])
        c = f_g * c + i_g * g_g
        h = o_g * jnp.tanh(c)
        return (h, c), h

    init = (jnp.zeros((B, H), jnp.float32), jnp.zeros((B, H), jnp.float32))
    _, hs = lax.scan(step, init, jnp.transpose(inputs, (1, 0, 2)))
    hs = jnp.transpose(hs, (1, 0, 2))                             # (B, T, H)
    return hs @ w_fc.T + b_fc


# --------------------------------------------------------------------------- #
# Params / test                                                                #
# --------------------------------------------------------------------------- #
def init_params(key, embed_size, hidden_size, vocab_size):
    """Deterministic parameter init (xavier-ish; shapes match the nn.Module)."""
    ks = jax.random.split(key, 7)

    def xavier(k, shape):
        fan_in, fan_out = shape[1], shape[0]
        bound = (6.0 / (fan_in + fan_out)) ** 0.5
        return jax.random.uniform(k, shape, jnp.float32, -bound, bound)

    def lstm_uniform(k, shape):
        bound = 1.0 / (hidden_size ** 0.5)
        return jax.random.uniform(k, shape, jnp.float32, -bound, bound)

    return {
        "embedding": xavier(ks[0], (vocab_size, embed_size)),
        "w_ih": lstm_uniform(ks[1], (4 * hidden_size, embed_size)),
        "w_hh": lstm_uniform(ks[2], (4 * hidden_size, hidden_size)),
        "b_ih": lstm_uniform(ks[3], (4 * hidden_size,)),
        "b_hh": lstm_uniform(ks[4], (4 * hidden_size,)),
        "w_fc": xavier(ks[5], (vocab_size, hidden_size)),
        "b_fc": jnp.zeros((vocab_size,), jnp.float32),
    }


if __name__ == "__main__":
    # small shapes consistent with the module
    embed_size = 32
    hidden_size = 32
    vocab_size = 64
    batch = 2
    seq_len = 8          # LSTM sequence length T = 1 + (seq_len - 1) = 8

    key = jax.random.PRNGKey(0)
    k_p, k_f, k_c = jax.random.split(key, 3)

    params = init_params(k_p, embed_size, hidden_size, vocab_size)
    features = jax.random.normal(k_f, (batch, embed_size), jnp.float32)
    captions = jax.random.randint(k_c, (batch, seq_len), 0, vocab_size, jnp.int32)

    out = decoder_rnn_forward(features, captions, params)
    out = jax.block_until_ready(out)

    expected_shape = (batch, seq_len, vocab_size)
    assert out.shape == expected_shape, (out.shape, expected_shape)
    assert bool(jnp.all(jnp.isfinite(out)))

    # sanity check against an f32 pure-JAX reference (bf16 operands => loose tol)
    ref = decoder_rnn_reference(features, captions, params)
    max_err = float(jnp.max(jnp.abs(out - ref)))
    assert max_err < 0.25, f"max abs error vs reference too large: {max_err}"

    print("KERNEL_OK")
</pallas_src>

<mosaic_0001>
module attributes {stable_mosaic.version = 11 : i64} {
  func.func @lstm_chunk_kernel(%arg0: i32, %arg1: memref<8x2x32xbf16, #tpu.memory_space<vmem>>, %arg2: memref<32x128xbf16, #tpu.memory_space<vmem>>, %arg3: memref<32x128xbf16, #tpu.memory_space<vmem>>, %arg4: memref<1x128xf32, #tpu.memory_space<vmem>>, %arg5: memref<2x8x32xbf16, #tpu.memory_space<vmem>>, %arg6: memref<2x32xf32, #tpu.memory_space<vmem>>, %arg7: memref<2x32xf32, #tpu.memory_space<vmem>>) attributes {dimension_semantics = [#tpu.dimension_semantics<arbitrary>], iteration_bounds = array<i64: 1>, scalar_prefetch = 0 : i64, scratch_operands = 2 : i64, tpu.core_type = #tpu.core_type<tc>, window_params = [{transform_indices = @transform_0, window_bounds = array<i64: 8, 2, 32>}, {pipeline_mode = #tpu.pipeline_mode<synchronous>, transform_indices = @transform_1, window_bounds = array<i64: 32, 128>}, {pipeline_mode = #tpu.pipeline_mode<synchronous>, transform_indices = @transform_2, window_bounds = array<i64: 32, 128>}, {pipeline_mode = #tpu.pipeline_mode<synchronous>, transform_indices = @transform_3, window_bounds = array<i64: 1, 128>}, {transform_indices = @transform_4, window_bounds = array<i64: 2, 8, 32>}]} {
    %c0_i32 = arith.constant 0 : i32
    %0 = arith.cmpi eq, %arg0, %c0_i32 : i32
    %1 = arith.extui %0 : i1 to i32
    %c0_i32_0 = arith.constant 0 : i32
    %2 = arith.cmpi ne, %1, %c0_i32_0 : i32
    scf.if %2 {
      %cst_122 = arith.constant 0.000000e+00 : f32
      %320 = vector.broadcast %cst_122 : f32 to vector<2x32xf32>
      %c0_123 = arith.constant 0 : index
      %c0_124 = arith.constant 0 : index
      %321 = vector.load %arg6[%c0_123, %c0_124] : memref<2x32xf32, #tpu.memory_space<vmem>>, vector<2x32xf32>
      tpu.vector_store %arg6[%c0_123, %c0_124], %320 {strides = array<i32>} : memref<2x32xf32, #tpu.memory_space<vmem>>, vector<2x32xf32>,
      %cst_125 = arith.constant 0.000000e+00 : f32
      %322 = vector.broadcast %cst_125 : f32 to vector<2x32xf32>
      %c0_126 = arith.constant 0 : index
      %c0_127 = arith.constant 0 : index
      %323 = vector.load %arg7[%c0_126, %c0_127] : memref<2x32xf32, #tpu.memory_space<vmem>>, vector<2x32xf32>
      tpu.vector_store %arg7[%c0_126, %c0_127], %322 {strides = array<i32>} : memref<2x32xf32, #tpu.memory_space<vmem>>, vector<2x32xf32>,
    } else {
    }
    %c0 = arith.constant 0 : index
    %c0_1 = arith.constant 0 : index
    %3 = vector.load %arg4[%c0, %c0_1] : memref<1x128xf32, #tpu.memory_space<vmem>>, vector<1x128xf32>
    %c0_2 = arith.constant 0 : index
    %c0_3 = arith.constant 0 : index
    %4 = vector.load %arg6[%c0_2, %c0_3] : memref<2x32xf32, #tpu.memory_space<vmem>>, vector<2x32xf32>
    %c0_4 = arith.constant 0 : index
    %c0_5 = arith.constant 0 : index
    %5 = vector.load %arg7[%c0_4, %c0_5] : memref<2x32xf32, #tpu.memory_space<vmem>>, vector<2x32xf32>
    %c0_6 = arith.constant 0 : index
    %c0_7 = arith.constant 0 : index
    %c0_8 = arith.constant 0 : index
    %6 = vector.load %arg1[%c0_6, %c0_7, %c0_8] : memref<8x2x32xbf16, #tpu.memory_space<vmem>>, vector<1x2x32xbf16>
    %7 = vector.shape_cast %6 : vector<1x2x32xbf16> to vector<2x32xbf16>
    %c0_9 = arith.constant 0 : index
    %c0_10 = arith.constant 0 : index
    %8 = vector.load %arg2[%c0_9, %c0_10] : memref<32x128xbf16, #tpu.memory_space<vmem>>, vector<32x128xbf16>
    %cst = arith.constant dense<0.000000e+00> : vector<2x128xf32>
    %9 = tpu.matmul %7, %8, %cst {dimension_numbers = #tpu.dot_dimension_numbers<[1], [0], [0], [1], [0, 0, 1, 1], [], []>} : vector<2x32xbf16>, vector<32x128xbf16>, vector<2x128xf32> -> vector<2x128xf32>
    %10 = arith.truncf %4 : vector<2x32xf32> to vector<2x32xbf16>
    %c0_11 = arith.constant 0 : index
    %c0_12 = arith.constant 0 : index
    %11 = vector.load %arg3[%c0_11, %c0_12] : memref<32x128xbf16, #tpu.memory_space<vmem>>, vector<32x128xbf16>
    %cst_13 = arith.constant dense<0.000000e+00> : vector<2x128xf32>
    %12 = tpu.matmul %10, %11, %cst_13 {dimension_numbers = #tpu.dot_dimension_numbers<[1], [0], [0], [1], [0, 0, 1, 1], [], []>} : vector<2x32xbf16>, vector<32x128xbf16>, vector<2x128xf32> -> vector<2x128xf32>
    %13 = arith.addf %9, %12 : vector<2x128xf32>
    %14 = vector.broadcast %3 : vector<1x128xf32> to vector<2x128xf32>
    %15 = arith.addf %13, %14 : vector<2x128xf32>
    %16 = vector.extract_strided_slice %15 {offsets = [0, 0], sizes = [2, 32], strides = [1, 1]} : vector<2x128xf32> to vector<2x32xf32>
    %17 = arith.negf %16 : vector<2x32xf32>
    %18 = math.exp %17 : vector<2x32xf32>
    %cst_14 = arith.constant 1.000000e+00 : f32
    %19 = vector.broadcast %cst_14 : f32 to vector<2x32xf32>
    %20 = arith.addf %19, %18 : vector<2x32xf32>
    %21 = arith.divf %19, %20 : vector<2x32xf32>
    %22 = vector.extract_strided_slice %15 {offsets = [0, 32], sizes = [2, 32], strides = [1, 1]} : vector<2x128xf32> to vector<2x32xf32>
    %23 = arith.negf %22 : vector<2x32xf32>
    %24 = math.exp %23 : vector<2x32xf32>
    %cst_15 = arith.constant 1.000000e+00 : f32
    %25 = vector.broadcast %cst_15 : f32 to vector<2x32xf32>
    %26 = arith.addf %25, %24 : vector<2x32xf32>
    %27 = arith.divf %25, %26 : vector<2x32xf32>
    %28 = vector.extract_strided_slice %15 {offsets = [0, 64], sizes = [2, 32], strides = [1, 1]} : vector<2x128xf32> to vector<2x32xf32>
    %29 = math.tanh %28 : vector<2x32xf32>
    %30 = vector.extract_strided_slice %15 {offsets = [0, 96], sizes = [2, 32], strides = [1, 1]} : vector<2x128xf32> to vector<2x32xf32>
    %31 = arith.negf %30 : vector<2x32xf32>
    %32 = math.exp %31 : vector<2x32xf32>
    %cst_16 = arith.constant 1.000000e+00 : f32
    %33 = vector.broadcast %cst_16 : f32 to vector<2x32xf32>
    %34 = arith.addf %33, %32 : vector<2x32xf32>
    %35 = arith.divf %33, %34 : vector<2x32xf32>
    %36 = arith.mulf %27, %5 : vector<2x32xf32>
    %37 = arith.mulf %21, %29 : vector<2x32xf32>
    %38 = arith.addf %36, %37 : vector<2x32xf32>
    %39 = math.tanh %38 : vector<2x32xf32>
    %40 = arith.mulf %35, %39 : vector<2x32xf32>
    %41 = arith.truncf %40 : vector<2x32xf32> to vector<2x32xbf16>
    %c0_17 = arith.constant 0 : index
    %c0_18 = arith.constant 0 : index
    %c0_19 = arith.constant 0 : index
    %42 = vector.load %arg5[%c0_17, %c0_18, %c0_19] : memref<2x8x32xbf16, #tpu.memory_space<vmem>>, vector<2x1x32xbf16>
    %43 = vector.shape_cast %42 : vector<2x1x32xbf16> to vector<2x32xbf16>
    %44 = vector.shape_cast %41 : vector<2x32xbf16> to vector<2x1x32xbf16>
    tpu.vector_store %arg5[%c0_17, %c0_18, %c0_19], %44 {strides = array<i32>} : memref<2x8x32xbf16, #tpu.memory_space<vmem>>, vector<2x1x32xbf16>,
    %c1 = arith.constant 1 : index
    %c0_20 = arith.constant 0 : index
    %c0_21 = arith.constant 0 : index
    %45 = vector.load %arg1[%c1, %c0_20, %c0_21] : memref<8x2x32xbf16, #tpu.memory_space<vmem>>, vector<1x2x32xbf16>
    %46 = vector.shape_cast %45 : vector<1x2x32xbf16> to vector<2x32xbf16>
    %c0_22 = arith.constant 0 : index
    %c0_23 = arith.constant 0 : index
    %47 = vector.load %arg2[%c0_22, %c0_23] : memref<32x128xbf16, #tpu.memory_space<vmem>>, vector<32x128xbf16>
    %cst_24 = arith.constant dense<0.000000e+00> : vector<2x128xf32>
    %48 = tpu.matmul %46, %47, %cst_24 {dimension_numbers = #tpu.dot_dimension_numbers<[1], [0], [0], [1], [0, 0, 1, 1], [], []>} : vector<2x32xbf16>, vector<32x128xbf16>, vector<2x128xf32> -> vector<2x128xf32>
    %49 = arith.truncf %40 : vector<2x32xf32> to vector<2x32xbf16>
    %c0_25 = arith.constant 0 : index
    %c0_26 = arith.constant 0 : index
    %50 = vector.load %arg3[%c0_25, %c0_26] : memref<32x128xbf16, #tpu.memory_space<vmem>>, vector<32x128xbf16>
    %cst_27 = arith.constant dense<0.000000e+00> : vector<2x128xf32>
    %51 = tpu.matmul %49, %50, %cst_27 {dimension_numbers = #tpu.dot_dimension_numbers<[1], [0], [0], [1], [0, 0, 1, 1], [], []>} : vector<2x32xbf16>, vector<32x128xbf16>, vector<2x128xf32> -> vector<2x128xf32>
    %52 = arith.addf %48, %51 : vector<2x128xf32>
    %53 = vector.broadcast %3 : vector<1x128xf32> to vector<2x128xf32>
    %54 = arith.addf %52, %53 : vector<2x128xf32>
    %55 = vector.extract_strided_slice %54 {offsets = [0, 0], sizes = [2, 32], strides = [1, 1]} : vector<2x128xf32> to vector<2x32xf32>
    %56 = arith.negf %55 : vector<2x32xf32>
    %57 = math.exp %56 : vector<2x32xf32>
    %cst_28 = arith.constant 1.000000e+00 : f32
    %58 = vector.broadcast %cst_28 : f32 to vector<2x32xf32>
    %59 = arith.addf %58, %57 : vector<2x32xf32>
    %60 = arith.divf %58, %59 : vector<2x32xf32>
    %61 = vector.extract_strided_slice %54 {offsets = [0, 32], sizes = [2, 32], strides = [1, 1]} : vector<2x128xf32> to vector<2x32xf32>
    %62 = arith.negf %61 : vector<2x32xf32>
    %63 = math.exp %62 : vector<2x32xf32>
    %cst_29 = arith.constant 1.000000e+00 : f32
    %64 = vector.broadcast %cst_29 : f32 to vector<2x32xf32>
    %65 = arith.addf %64, %63 : vector<2x32xf32>
    %66 = arith.divf %64, %65 : vector<2x32xf32>
    %67 = vector.extract_strided_slice %54 {offsets = [0, 64], sizes = [2, 32], strides = [1, 1]} : vector<2x128xf32> to vector<2x32xf32>
    %68 = math.tanh %67 : vector<2x32xf32>
    %69 = vector.extract_strided_slice %54 {offsets = [0, 96], sizes = [2, 32], strides = [1, 1]} : vector<2x128xf32> to vector<2x32xf32>
    %70 = arith.negf %69 : vector<2x32xf32>
    %71 = math.exp %70 : vector<2x32xf32>
    %cst_30 = arith.constant 1.000000e+00 : f32
    %72 = vector.broadcast %cst_30 : f32 to vector<2x32xf32>
    %73 = arith.addf %72, %71 : vector<2x32xf32>
    %74 = arith.divf %72, %73 : vector<2x32xf32>
    %75 = arith.mulf %66, %38 : vector<2x32xf32>
    %76 = arith.mulf %60, %68 : vector<2x32xf32>
    %77 = arith.addf %75, %76 : vector<2x32xf32>
    %78 = math.tanh %77 : vector<2x32xf32>
    %79 = arith.mulf %74, %78 : vector<2x32xf32>
    %80 = arith.truncf %79 : vector<2x32xf32> to vector<2x32xbf16>
    %c0_31 = arith.constant 0 : index
    %c1_32 = arith.constant 1 : index
    %c0_33 = arith.constant 0 : index
    %81 = vector.load %arg5[%c0_31, %c1_32, %c0_33] : memref<2x8x32xbf16, #tpu.memory_space<vmem>>, vector<2x1x32xbf16>
    %82 = vector.shape_cast %81 : vector<2x1x32xbf16> to vector<2x32xbf16>
    %83 = vector.shape_cast %80 : vector<2x32xbf16> to vector<2x1x32xbf16>
    tpu.vector_store %arg5[%c0_31, %c1_32, %c0_33], %83 {strides = array<i32>} : memref<2x8x32xbf16, #tpu.memory_space<vmem>>, vector<2x1x32xbf16>,
    %c2 = arith.constant 2 : index
    %c0_34 = arith.constant 0 : index
    %c0_35 = arith.constant 0 : index
    %84 = vector.load %arg1[%c2, %c0_34, %c0_35] : memref<8x2x32xbf16, #tpu.memory_space<vmem>>, vector<1x2x32xbf16>
    %85 = vector.shape_cast %84 : vector<1x2x32xbf16> to vector<2x32xbf16>
    %c0_36 = arith.constant 0 : index
    %c0_37 = arith.constant 0 : index
    %86 = vector.load %arg2[%c0_36, %c0_37] : memref<32x128xbf16, #tpu.memory_space<vmem>>, vector<32x128xbf16>
    %cst_38 = arith.constant dense<0.000000e+00> : vector<2x128xf32>
    %87 = tpu.matmul %85, %86, %cst_38 {dimension_numbers = #tpu.dot_dimension_numbers<[1], [0], [0], [1], [0, 0, 1, 1], [], []>} : vector<2x32xbf16>, vector<32x128xbf16>, vector<2x128xf32> -> vector<2x128xf32>
    %88 = arith.truncf %79 : vector<2x32xf32> to vector<2x32xbf16>
    %c0_39 = arith.constant 0 : index
    %c0_40 = arith.constant 0 : index
    %89 = vector.load %arg3[%c0_39, %c0_40] : memref<32x128xbf16, #tpu.memory_space<vmem>>, vector<32x128xbf16>
    %cst_41 = arith.constant dense<0.000000e+00> : vector<2x128xf32>
    %90 = tpu.matmul %88, %89, %cst_41 {dimension_numbers = #tpu.dot_dimension_numbers<[1], [0], [0], [1], [0, 0, 1, 1], [], []>} : vector<2x32xbf16>, vector<32x128xbf16>, vector<2x128xf32> -> vector<2x128xf32>
    %91 = arith.addf %87, %90 : vector<2x128xf32>
    %92 = vector.broadcast %3 : vector<1x128xf32> to vector<2x128xf32>
    %93 = arith.addf %91, %92 : vector<2x128xf32>
    %94 = vector.extract_strided_slice %93 {offsets = [0, 0], sizes = [2, 32], strides = [1, 1]} : vector<2x128xf32> to vector<2x32xf32>
    %95 = arith.negf %94 : vector<2x32xf32>
    %96 = math.exp %95 : vector<2x32xf32>
    %cst_42 = arith.constant 1.000000e+00 : f32
    %97 = vector.broadcast %cst_42 : f32 to vector<2x32xf32>
    %98 = arith.addf %97, %96 : vector<2x32xf32>
    %99 = arith.divf %97, %98 : vector<2x32xf32>
    %100 = vector.extract_strided_slice %93 {offsets = [0, 32], sizes = [2, 32], strides = [1, 1]} : vector<2x128xf32> to vector<2x32xf32>
    %101 = arith.negf %100 : vector<2x32xf32>
    %102 = math.exp %101 : vector<2x32xf32>
    %cst_43 = arith.constant 1.000000e+00 : f32
    %103 = vector.broadcast %cst_43 : f32 to vector<2x32xf32>
    %104 = arith.addf %103, %102 : vector<2x32xf32>
    %105 = arith.divf %103, %104 : vector<2x32xf32>
    %106 = vector.extract_strided_slice %93 {offsets = [0, 64], sizes = [2, 32], strides = [1, 1]} : vector<2x128xf32> to vector<2x32xf32>
    %107 = math.tanh %106 : vector<2x32xf32>
    %108 = vector.extract_strided_slice %93 {offsets = [0, 96], sizes = [2, 32], strides = [1, 1]} : vector<2x128xf32> to vector<2x32xf32>
    %109 = arith.negf %108 : vector<2x32xf32>
    %110 = math.exp %109 : vector<2x32xf32>
    %cst_44 = arith.constant 1.000000e+00 : f32
    %111 = vector.broadcast %cst_44 : f32 to vector<2x32xf32>
    %112 = arith.addf %111, %110 : vector<2x32xf32>
    %113 = arith.divf %111, %112 : vector<2x32xf32>
    %114 = arith.mulf %105, %77 : vector<2x32xf32>
    %115 = arith.mulf %99, %107 : vector<2x32xf32>
    %116 = arith.addf %114, %115 : vector<2x32xf32>
    %117 = math.tanh %116 : vector<2x32xf32>
    %118 = arith.mulf %113, %117 : vector<2x32xf32>
    %119 = arith.truncf %118 : vector<2x32xf32> to vector<2x32xbf16>
    %c0_45 = arith.constant 0 : index
    %c2_46 = arith.constant 2 : index
    %c0_47 = arith.constant 0 : index
    %120 = vector.load %arg5[%c0_45, %c2_46, %c0_47] : memref<2x8x32xbf16, #tpu.memory_space<vmem>>, vector<2x1x32xbf16>
    %121 = vector.shape_cast %120 : vector<2x1x32xbf16> to vector<2x32xbf16>
    %122 = vector.shape_cast %119 : vector<2x32xbf16> to vector<2x1x32xbf16>
    tpu.vector_store %arg5[%c0_45, %c2_46, %c0_47], %122 {strides = array<i32>} : memref<2x8x32xbf16, #tpu.memory_space<vmem>>, vector<2x1x32xbf16>,
    %c3 = arith.constant 3 : index
    %c0_48 = arith.constant 0 : index
    %c0_49 = arith.constant 0 : index
    %123 = vector.load %arg1[%c3, %c0_48, %c0_49] : memref<8x2x32xbf16, #tpu.memory_space<vmem>>, vector<1x2x32xbf16>
    %124 = vector.shape_cast %123 : vector<1x2x32xbf16> to vector<2x32xbf16>
    %c0_50 = arith.constant 0 : index
    %c0_51 = arith.constant 0 : index
    %125 = vector.load %arg2[%c0_50, %c0_51] : memref<32x128xbf16, #tpu.memory_space<vmem>>, vector<32x128xbf16>
    %cst_52 = arith.constant dense<0.000000e+00> : vector<2x128xf32>
    %126 = tpu.matmul %124, %125, %cst_52 {dimension_numbers = #tpu.dot_dimension_numbers<[1], [0], [0], [1], [0, 0, 1, 1], [], []>} : vector<2x32xbf16>, vector<32x128xbf16>, vector<2x128xf32> -> vector<2x128xf32>
    %127 = arith.truncf %118 : vector<2x32xf32> to vector<2x32xbf16>
    %c0_53 = arith.constant 0 : index
    %c0_54 = arith.constant 0 : index
    %128 = vector.load %arg3[%c0_53, %c0_54] : memref<32x128xbf16, #tpu.memory_space<vmem>>, vector<32x128xbf16>
    %cst_55 = arith.constant dense<0.000000e+00> : vector<2x128xf32>
    %129 = tpu.matmul %127, %128, %cst_55 {dimension_numbers = #tpu.dot_dimension_numbers<[1], [0], [0], [1], [0, 0, 1, 1], [], []>} : vector<2x32xbf16>, vector<32x128xbf16>, vector<2x128xf32> -> vector<2x128xf32>
    %130 = arith.addf %126, %129 : vector<2x128xf32>
    %131 = vector.broadcast %3 : vector<1x128xf32> to vector<2x128xf32>
    %132 = arith.addf %130, %131 : vector<2x128xf32>
    %133 = vector.extract_strided_slice %132 {offsets = [0, 0], sizes = [2, 32], strides = [1, 1]} : vector<2x128xf32> to vector<2x32xf32>
    %134 = arith.negf %133 : vector<2x32xf32>
    %135 = math.exp %134 : vector<2x32xf32>
    %cst_56 = arith.constant 1.000000e+00 : f32
    %136 = vector.broadcast %cst_56 : f32 to vector<2x32xf32>
    %137 = arith.addf %136, %135 : vector<2x32xf32>
    %138 = arith.divf %136, %137 : vector<2x32xf32>
    %139 = vector.extract_strided_slice %132 {offsets = [0, 32], sizes = [2, 32], strides = [1, 1]} : vector<2x128xf32> to vector<2x32xf32>
    %140 = arith.negf %139 : vector<2x32xf32>
    %141 = math.exp %140 : vector<2x32xf32>
    %cst_57 = arith.constant 1.000000e+00 : f32
    %142 = vector.broadcast %cst_57 : f32 to vector<2x32xf32>
    %143 = arith.addf %142, %141 : vector<2x32xf32>
    %144 = arith.divf %142, %143 : vector<2x32xf32>
    %145 = vector.extract_strided_slice %132 {offsets = [0, 64], sizes = [2, 32], strides = [1, 1]} : vector<2x128xf32> to vector<2x32xf32>
    %146 = math.tanh %145 : vector<2x32xf32>
    %147 = vector.extract_strided_slice %132 {offsets = [0, 96], sizes = [2, 32], strides = [1, 1]} : vector<2x128xf32> to vector<2x32xf32>
    %148 = arith.negf %147 : vector<2x32xf32>
    %149 = math.exp %148 : vector<2x32xf32>
    %cst_58 = arith.constant 1.000000e+00 : f32
    %150 = vector.broadcast %cst_58 : f32 to vector<2x32xf32>
    %151 = arith.addf %150, %149 : vector<2x32xf32>
    %152 = arith.divf %150, %151 : vector<2x32xf32>
    %153 = arith.mulf %144, %116 : vector<2x32xf32>
    %154 = arith.mulf %138, %146 : vector<2x32xf32>
    %155 = arith.addf %153, %154 : vector<2x32xf32>
    %156 = math.tanh %155 : vector<2x32xf32>
    %157 = arith.mulf %152, %156 : vector<2x32xf32>
    %158 = arith.truncf %157 : vector<2x32xf32> to vector<2x32xbf16>
    %c0_59 = arith.constant 0 : index
    %c3_60 = arith.constant 3 : index
    %c0_61 = arith.constant 0 : index
    %159 = vector.load %arg5[%c0_59, %c3_60, %c0_61] : memref<2x8x32xbf16, #tpu.memory_space<vmem>>, vector<2x1x32xbf16>
    %160 = vector.shape_cast %159 : vector<2x1x32xbf16> to vector<2x32xbf16>
    %161 = vector.shape_cast %158 : vector<2x32xbf16> to vector<2x1x32xbf16>
    tpu.vector_store %arg5[%c0_59, %c3_60, %c0_61], %161 {strides = array<i32>} : memref<2x8x32xbf16, #tpu.memory_space<vmem>>, vector<2x1x32xbf16>,
    %c4 = arith.constant 4 : index
    %c0_62 = arith.constant 0 : index
    %c0_63 = arith.constant 0 : index
    %162 = vector.load %arg1[%c4, %c0_62, %c0_63] : memref<8x2x32xbf16, #tpu.memory_space<vmem>>, vector<1x2x32xbf16>
    %163 = vector.shape_cast %162 : vector<1x2x32xbf16> to vector<2x32xbf16>
    %c0_64 = arith.constant 0 : index
    %c0_65 = arith.constant 0 : index
    %164 = vector.load %arg2[%c0_64, %c0_65] : memref<32x128xbf16, #tpu.memory_space<vmem>>, vector<32x128xbf16>
    %cst_66 = arith.constant dense<0.000000e+00> : vector<2x128xf32>
    %165 = tpu.matmul %163, %164, %cst_66 {dimension_numbers = #tpu.dot_dimension_numbers<[1], [0], [0], [1], [0, 0, 1, 1], [], []>} : vector<2x32xbf16>, vector<32x128xbf16>, vector<2x128xf32> -> vector<2x128xf32>
    %166 = arith.truncf %157 : vector<2x32xf32> to vector<2x32xbf16>
    %c0_67 = arith.constant 0 : index
    %c0_68 = arith.constant 0 : index
    %167 = vector.load %arg3[%c0_67, %c0_68] : memref<32x128xbf16, #tpu.memory_space<vmem>>, vector<32x128xbf16>
    %cst_69 = arith.constant dense<0.000000e+00> : vector<2x128xf32>
    %168 = tpu.matmul %166, %167, %cst_69 {dimension_numbers = #tpu.dot_dimension_numbers<[1], [0], [0], [1], [0, 0, 1, 1], [], []>} : vector<2x32xbf16>, vector<32x128xbf16>, vector<2x128xf32> -> vector<2x128xf32>
    %169 = arith.addf %165, %168 : vector<2x128xf32>
    %170 = vector.broadcast %3 : vector<1x128xf32> to vector<2x128xf32>
    %171 = arith.addf %169, %170 : vector<2x128xf32>
    %172 = vector.extract_strided_slice %171 {offsets = [0, 0], sizes = [2, 32], strides = [1, 1]} : vector<2x128xf32> to vector<2x32xf32>
    %173 = arith.negf %172 : vector<2x32xf32>
    %174 = math.exp %173 : vector<2x32xf32>
    %cst_70 = arith.constant 1.000000e+00 : f32
    %175 = vector.broadcast %cst_70 : f32 to vector<2x32xf32>
    %176 = arith.addf %175, %174 : vector<2x32xf32>
    %177 = arith.divf %175, %176 : vector<2x32xf32>
    %178 = vector.extract_strided_slice %171 {offsets = [0, 32], sizes = [2, 32], strides = [1, 1]} : vector<2x128xf32> to vector<2x32xf32>
    %179 = arith.negf %178 : vector<2x32xf32>
    %180 = math.exp %179 : vector<2x32xf32>
    %cst_71 = arith.constant 1.000000e+00 : f32
    %181 = vector.broadcast %cst_71 : f32 to vector<2x32xf32>
    %182 = arith.addf %181, %180 : vector<2x32xf32>
    %183 = arith.divf %181, %182 : vector<2x32xf32>
    %184 = vector.extract_strided_slice %171 {offsets = [0, 64], sizes = [2, 32], strides = [1, 1]} : vector<2x128xf32> to vector<2x32xf32>
    %185 = math.tanh %184 : vector<2x32xf32>
    %186 = vector.extract_strided_slice %171 {offsets = [0, 96], sizes = [2, 32], strides = [1, 1]} : vector<2x128xf32> to vector<2x32xf32>
    %187 = arith.negf %186 : vector<2x32xf32>
    %188 = math.exp %187 : vector<2x32xf32>
    %cst_72 = arith.constant 1.000000e+00 : f32
    %189 = vector.broadcast %cst_72 : f32 to vector<2x32xf32>
    %190 = arith.addf %189, %188 : vector<2x32xf32>
    %191 = arith.divf %189, %190 : vector<2x32xf32>
    %192 = arith.mulf %183, %155 : vector<2x32xf32>
    %193 = arith.mulf %177, %185 : vector<2x32xf32>
    %194 = arith.addf %192, %193 : vector<2x32xf32>
    %195 = math.tanh %194 : vector<2x32xf32>
    %196 = arith.mulf %191, %195 : vector<2x32xf32>
    %197 = arith.truncf %196 : vector<2x32xf32> to vector<2x32xbf16>
    %c0_73 = arith.constant 0 : index
    %c4_74 = arith.constant 4 : index
    %c0_75 = arith.constant 0 : index
    %198 = vector.load %arg5[%c0_73, %c4_74, %c0_75] : memref<2x8x32xbf16, #tpu.memory_space<vmem>>, vector<2x1x32xbf16>
    %199 = vector.shape_cast %198 : vector<2x1x32xbf16> to vector<2x32xbf16>
    %200 = vector.shape_cast %197 : vector<2x32xbf16> to vector<2x1x32xbf16>
    tpu.vector_store %arg5[%c0_73, %c4_74, %c0_75], %200 {strides = array<i32>} : memref<2x8x32xbf16, #tpu.memory_space<vmem>>, vector<2x1x32xbf16>,
    %c5 = arith.constant 5 : index
    %c0_76 = arith.constant 0 : index
    %c0_77 = arith.constant 0 : index
    %201 = vector.load %arg1[%c5, %c0_76, %c0_77] : memref<8x2x32xbf16, #tpu.memory_space<vmem>>, vector<1x2x32xbf16>
    %202 = vector.shape_cast %201 : vector<1x2x32xbf16> to vector<2x32xbf16>
    %c0_78 = arith.constant 0 : index
    %c0_79 = arith.constant 0 : index
    %203 = vector.load %arg2[%c0_78, %c0_79] : memref<32x128xbf16, #tpu.memory_space<vmem>>, vector<32x128xbf16>
    %cst_80 = arith.constant dense<0.000000e+00> : vector<2x128xf32>
    %204 = tpu.matmul %202, %203, %cst_80 {dimension_numbers = #tpu.dot_dimension_numbers<[1], [0], [0], [1], [0, 0, 1, 1], [], []>} : vector<2x32xbf16>, vector<32x128xbf16>, vector<2x128xf32> -> vector<2x128xf32>
    %205 = arith.truncf %196 : vector<2x32xf32> to vector<2x32xbf16>
    %c0_81 = arith.constant 0 : index
    %c0_82 = arith.constant 0 : index
    %206 = vector.load %arg3[%c0_81, %c0_82] : memref<32x128xbf16, #tpu.memory_space<vmem>>, vector<32x128xbf16>
    %cst_83 = arith.constant dense<0.000000e+00> : vector<2x128xf32>
    %207 = tpu.matmul %205, %206, %cst_83 {dimension_numbers = #tpu.dot_dimension_numbers<[1], [0], [0], [1], [0, 0, 1, 1], [], []>} : vector<2x32xbf16>, vector<32x128xbf16>, vector<2x128xf32> -> vector<2x128xf32>
    %208 = arith.addf %204, %207 : vector<2x128xf32>
    %209 = vector.broadcast %3 : vector<1x128xf32> to vector<2x128xf32>
    %210 = arith.addf %208, %209 : vector<2x128xf32>
    %211 = vector.extract_strided_slice %210 {offsets = [0, 0], sizes = [2, 32], strides = [1, 1]} : vector<2x128xf32> to vector<2x32xf32>
    %212 = arith.negf %211 : vector<2x32xf32>
    %213 = math.exp %212 : vector<2x32xf32>
    %cst_84 = arith.constant 1.000000e+00 : f32
    %214 = vector.broadcast %cst_84 : f32 to vector<2x32xf32>
    %215 = arith.addf %214, %213 : vector<2x32xf32>
    %216 = arith.divf %214, %215 : vector<2x32xf32>
    %217 = vector.extract_strided_slice %210 {offsets = [0, 32], sizes = [2, 32], strides = [1, 1]} : vector<2x128xf32> to vector<2x32xf32>
    %218 = arith.negf %217 : vector<2x32xf32>
    %219 = math.exp %218 : vector<2x32xf32>
    %cst_85 = arith.constant 1.000000e+00 : f32
    %220 = vector.broadcast %cst_85 : f32 to vector<2x32xf32>
    %221 = arith.addf %220, %219 : vector<2x32xf32>
    %222 = arith.divf %220, %221 : vector<2x32xf32>
    %223 = vector.extract_strided_slice %210 {offsets = [0, 64], sizes = [2, 32], strides = [1, 1]} : vector<2x128xf32> to vector<2x32xf32>
    %224 = math.tanh %223 : vector<2x32xf32>
    %225 = vector.extract_strided_slice %210 {offsets = [0, 96], sizes = [2, 32], strides = [1, 1]} : vector<2x128xf32> to vector<2x32xf32>
    %226 = arith.negf %225 : vector<2x32xf32>
    %227 = math.exp %226 : vector<2x32xf32>
    %cst_86 = arith.constant 1.000000e+00 : f32
    %228 = vector.broadcast %cst_86 : f32 to vector<2x32xf32>
    %229 = arith.addf %228, %227 : vector<2x32xf32>
    %230 = arith.divf %228, %229 : vector<2x32xf32>
    %231 = arith.mulf %222, %194 : vector<2x32xf32>
    %232 = arith.mulf %216, %224 : vector<2x32xf32>
    %233 = arith.addf %231, %232 : vector<2x32xf32>
    %234 = math.tanh %233 : vector<2x32xf32>
    %235 = arith.mulf %230, %234 : vector<2x32xf32>
    %236 = arith.truncf %235 : vector<2x32xf32> to vector<2x32xbf16>
    %c0_87 = arith.constant 0 : index
    %c5_88 = arith.constant 5 : index
    %c0_89 = arith.constant 0 : index
    %237 = vector.load %arg5[%c0_87, %c5_88, %c0_89] : memref<2x8x32xbf16, #tpu.memory_space<vmem>>, vector<2x1x32xbf16>
    %238 = vector.shape_cast %237 : vector<2x1x32xbf16> to vector<2x32xbf16>
    %239 = vector.shape_cast %236 : vector<2x32xbf16> to vector<2x1x32xbf16>
    tpu.vector_store %arg5[%c0_87, %c5_88, %c0_89], %239 {strides = array<i32>} : memref<2x8x32xbf16, #tpu.memory_space<vmem>>, vector<2x1x32xbf16>,
    %c6 = arith.constant 6 : index
    %c0_90 = arith.constant 0 : index
    %c0_91 = arith.constant 0 : index
    %240 = vector.load %arg1[%c6, %c0_90, %c0_91] : memref<8x2x32xbf16, #tpu.memory_space<vmem>>, vector<1x2x32xbf16>
    %241 = vector.shape_cast %240 : vector<1x2x32xbf16> to vector<2x32xbf16>
    %c0_92 = arith.constant 0 : index
    %c0_93 = arith.constant 0 : index
    %242 = vector.load %arg2[%c0_92, %c0_93] : memref<32x128xbf16, #tpu.memory_space<vmem>>, vector<32x128xbf16>
    %cst_94 = arith.constant dense<0.000000e+00> : vector<2x128xf32>
    %243 = tpu.matmul %241, %242, %cst_94 {dimension_numbers = #tpu.dot_dimension_numbers<[1], [0], [0], [1], [0, 0, 1, 1], [], []>} : vector<2x32xbf16>, vector<32x128xbf16>, vector<2x128xf32> -> vector<2x128xf32>
    %244 = arith.truncf %235 : vector<2x32xf32> to vector<2x32xbf16>
    %c0_95 = arith.constant 0 : index
    %c0_96 = arith.constant 0 : index
    %245 = vector.load %arg3[%c0_95, %c0_96] : memref<32x128xbf16, #tpu.memory_space<vmem>>, vector<32x128xbf16>
    %cst_97 = arith.constant dense<0.000000e+00> : vector<2x128xf32>
    %246 = tpu.matmul %244, %245, %cst_97 {dimension_numbers = #tpu.dot_dimension_numbers<[1], [0], [0], [1], [0, 0, 1, 1], [], []>} : vector<2x32xbf16>, vector<32x128xbf16>, vector<2x128xf32> -> vector<2x128xf32>
    %247 = arith.addf %243, %246 : vector<2x128xf32>
    %248 = vector.broadcast %3 : vector<1x128xf32> to vector<2x128xf32>
    %249 = arith.addf %247, %248 : vector<2x128xf32>
    %250 = vector.extract_strided_slice %249 {offsets = [0, 0], sizes = [2, 32], strides = [1, 1]} : vector<2x128xf32> to vector<2x32xf32>
    %251 = arith.negf %250 : vector<2x32xf32>
    %252 = math.exp %251 : vector<2x32xf32>
    %cst_98 = arith.constant 1.000000e+00 : f32
    %253 = vector.broadcast %cst_98 : f32 to vector<2x32xf32>
    %254 = arith.addf %253, %252 : vector<2x32xf32>
    %255 = arith.divf %253, %254 : vector<2x32xf32>
    %256 = vector.extract_strided_slice %249 {offsets = [0, 32], sizes = [2, 32], strides = [1, 1]} : vector<2x128xf32> to vector<2x32xf32>
    %257 = arith.negf %256 : vector<2x32xf32>
    %258 = math.exp %257 : vector<2x32xf32>
    %cst_99 = arith.constant 1.000000e+00 : f32
    %259 = vector.broadcast %cst_99 : f32 to vector<2x32xf32>
    %260 = arith.addf %259, %258 : vector<2x32xf32>
    %261 = arith.divf %259, %260 : vector<2x32xf32>
    %262 = vector.extract_strided_slice %249 {offsets = [0, 64], sizes = [2, 32], strides = [1, 1]} : vector<2x128xf32> to vector<2x32xf32>
    %263 = math.tanh %262 : vector<2x32xf32>
    %264 = vector.extract_strided_slice %249 {offsets = [0, 96], sizes = [2, 32], strides = [1, 1]} : vector<2x128xf32> to vector<2x32xf32>
    %265 = arith.negf %264 : vector<2x32xf32>
    %266 = math.exp %265 : vector<2x32xf32>
    %cst_100 = arith.constant 1.000000e+00 : f32
    %267 = vector.broadcast %cst_100 : f32 to vector<2x32xf32>
    %268 = arith.addf %267, %266 : vector<2x32xf32>
    %269 = arith.divf %267, %268 : vector<2x32xf32>
    %270 = arith.mulf %261, %233 : vector<2x32xf32>
    %271 = arith.mulf %255, %263 : vector<2x32xf32>
    %272 = arith.addf %270, %271 : vector<2x32xf32>
    %273 = math.tanh %272 : vector<2x32xf32>
    %274 = arith.mulf %269, %273 : vector<2x32xf32>
    %275 = arith.truncf %274 : vector<2x32xf32> to vector<2x32xbf16>
    %c0_101 = arith.constant 0 : index
    %c6_102 = arith.constant 6 : index
    %c0_103 = arith.constant 0 : index
    %276 = vector.load %arg5[%c0_101, %c6_102, %c0_103] : memref<2x8x32xbf16, #tpu.memory_space<vmem>>, vector<2x1x32xbf16>
    %277 = vector.shape_cast %276 : vector<2x1x32xbf16> to vector<2x32xbf16>
    %278 = vector.shape_cast %275 : vector<2x32xbf16> to vector<2x1x32xbf16>
    tpu.vector_store %arg5[%c0_101, %c6_102, %c0_103], %278 {strides = array<i32>} : memref<2x8x32xbf16, #tpu.memory_space<vmem>>, vector<2x1x32xbf16>,
    %c7 = arith.constant 7 : index
    %c0_104 = arith.constant 0 : index
    %c0_105 = arith.constant 0 : index
    %279 = vector.load %arg1[%c7, %c0_104, %c0_105] : memref<8x2x32xbf16, #tpu.memory_space<vmem>>, vector<1x2x32xbf16>
    %280 = vector.shape_cast %279 : vector<1x2x32xbf16> to vector<2x32xbf16>
    %c0_106 = arith.constant 0 : index
    %c0_107 = arith.constant 0 : index
    %281 = vector.load %arg2[%c0_106, %c0_107] : memref<32x128xbf16, #tpu.memory_space<vmem>>, vector<32x128xbf16>
    %cst_108 = arith.constant dense<0.000000e+00> : vector<2x128xf32>
    %282 = tpu.matmul %280, %281, %cst_108 {dimension_numbers = #tpu.dot_dimension_numbers<[1], [0], [0], [1], [0, 0, 1, 1], [], []>} : vector<2x32xbf16>, vector<32x128xbf16>, vector<2x128xf32> -> vector<2x128xf32>
    %283 = arith.truncf %274 : vector<2x32xf32> to vector<2x32xbf16>
    %c0_109 = arith.constant 0 : index
    %c0_110 = arith.constant 0 : index
    %284 = vector.load %arg3[%c0_109, %c0_110] : memref<32x128xbf16, #tpu.memory_space<vmem>>, vector<32x128xbf16>
    %cst_111 = arith.constant dense<0.000000e+00> : vector<2x128xf32>
    %285 = tpu.matmul %283, %284, %cst_111 {dimension_numbers = #tpu.dot_dimension_numbers<[1], [0], [0], [1], [0, 0, 1, 1], [], []>} : vector<2x32xbf16>, vector<32x128xbf16>, vector<2x128xf32> -> vector<2x128xf32>
    %286 = arith.addf %282, %285 : vector<2x128xf32>
    %287 = vector.broadcast %3 : vector<1x128xf32> to vector<2x128xf32>
    %288 = arith.addf %286, %287 : vector<2x128xf32>
    %289 = vector.extract_strided_slice %288 {offsets = [0, 0], sizes = [2, 32], strides = [1, 1]} : vector<2x128xf32> to vector<2x32xf32>
    %290 = arith.negf %289 : vector<2x32xf32>
    %291 = math.exp %290 : vector<2x32xf32>
    %cst_112 = arith.constant 1.000000e+00 : f32
    %292 = vector.broadcast %cst_112 : f32 to vector<2x32xf32>
    %293 = arith.addf %292, %291 : vector<2x32xf32>
    %294 = arith.divf %292, %293 : vector<2x32xf32>
    %295 = vector.extract_strided_slice %288 {offsets = [0, 32], sizes = [2, 32], strides = [1, 1]} : vector<2x128xf32> to vector<2x32xf32>
    %296 = arith.negf %295 : vector<2x32xf32>
    %297 = math.exp %296 : vector<2x32xf32>
    %cst_113 = arith.constant 1.000000e+00 : f32
    %298 = vector.broadcast %cst_113 : f32 to vector<2x32xf32>
    %299 = arith.addf %298, %297 : vector<2x32xf32>
    %300 = arith.divf %298, %299 : vector<2x32xf32>
    %301 = vector.extract_strided_slice %288 {offsets = [0, 64], sizes = [2, 32], strides = [1, 1]} : vector<2x128xf32> to vector<2x32xf32>
    %302 = math.tanh %301 : vector<2x32xf32>
    %303 = vector.extract_strided_slice %288 {offsets = [0, 96], sizes = [2, 32], strides = [1, 1]} : vector<2x128xf32> to vector<2x32xf32>
    %304 = arith.negf %303 : vector<2x32xf32>
    %305 = math.exp %304 : vector<2x32xf32>
    %cst_114 = arith.constant 1.000000e+00 : f32
    %306 = vector.broadcast %cst_114 : f32 to vector<2x32xf32>
    %307 = arith.addf %306, %305 : vector<2x32xf32>
    %308 = arith.divf %306, %307 : vector<2x32xf32>
    %309 = arith.mulf %300, %272 : vector<2x32xf32>
    %310 = arith.mulf %294, %302 : vector<2x32xf32>
    %311 = arith.addf %309, %310 : vector<2x32xf32>
    %312 = math.tanh %311 : vector<2x32xf32>
    %313 = arith.mulf %308, %312 : vector<2x32xf32>
    %314 = arith.truncf %313 : vector<2x32xf32> to vector<2x32xbf16>
    %c0_115 = arith.constant 0 : index
    %c7_116 = arith.constant 7 : index
    %c0_117 = arith.constant 0 : index
    %315 = vector.load %arg5[%c0_115, %c7_116, %c0_117] : memref<2x8x32xbf16, #tpu.memory_space<vmem>>, vector<2x1x32xbf16>
    %316 = vector.shape_cast %315 : vector<2x1x32xbf16> to vector<2x32xbf16>
    %317 = vector.shape_cast %314 : vector<2x32xbf16> to vector<2x1x32xbf16>
    tpu.vector_store %arg5[%c0_115, %c7_116, %c0_117], %317 {strides = array<i32>} : memref<2x8x32xbf16, #tpu.memory_space<vmem>>, vector<2x1x32xbf16>,
    %c0_118 = arith.constant 0 : index
    %c0_119 = arith.constant 0 : index
    %318 = vector.load %arg6[%c0_118, %c0_119] : memref<2x32xf32, #tpu.memory_space<vmem>>, vector<2x32xf32>
    tpu.vector_store %arg6[%c0_118, %c0_119], %313 {strides = array<i32>} : memref<2x32xf32, #tpu.memory_space<vmem>>, vector<2x32xf32>,
    %c0_120 = arith.constant 0 : index
    %c0_121 = arith.constant 0 : index
    %319 = vector.load %arg7[%c0_120, %c0_121] : memref<2x32xf32, #tpu.memory_space<vmem>>, vector<2x32xf32>
    tpu.vector_store %arg7[%c0_120, %c0_121], %311 {strides = array<i32>} : memref<2x32xf32, #tpu.memory_space<vmem>>, vector<2x32xf32>,
    return
  }
  func.func @transform_0(%arg0: i32) -> (i32, i32, i32) {
    %c0_i32 = arith.constant 0 : i32
    %c0_i32_0 = arith.constant 0 : i32
    %c0_i32_1 = arith.constant 0 : i32
    return %arg0, %c0_i32, %c0_i32_0 : i32, i32, i32
  }
  func.func @transform_1(%arg0: i32) -> (i32, i32) {
    %c0_i32 = arith.constant 0 : i32
    %c0_i32_0 = arith.constant 0 : i32
    %c0_i32_1 = arith.constant 0 : i32
    return %c0_i32, %c0_i32_0 : i32, i32
  }
  func.func @transform_2(%arg0: i32) -> (i32, i32) {
    %c0_i32 = arith.constant 0 : i32
    %c0_i32_0 = arith.constant 0 : i32
    %c0_i32_1 = arith.constant 0 : i32
    return %c0_i32, %c0_i32_0 : i32, i32
  }
  func.func @transform_3(%arg0: i32) -> (i32, i32) {
    %c0_i32 = arith.constant 0 : i32
    %c0_i32_0 = arith.constant 0 : i32
    %c0_i32_1 = arith.constant 0 : i32
    return %c0_i32, %c0_i32_0 : i32, i32
  }
  func.func @transform_4(%arg0: i32) -> (i32, i32, i32) {
    %c0_i32 = arith.constant 0 : i32
    %c0_i32_0 = arith.constant 0 : i32
    %c0_i32_1 = arith.constant 0 : i32
    return %c0_i32, %arg0, %c0_i32_0 : i32, i32, i32
  }
}

</mosaic_0001>

<bundles_post_ra>
// kernel: tpu_custom_call.1
= control target key start
LH: loop header
LB: loop body
LE: loop exit
PB: predicated region body
PF: predicated region fallthrough
CT: control target
= control target key end

     0   :  { %9 = vsyncpa [#allocation5], 0  ;;  %s2533_s0 = inlined_call_operand.hbm [shape: bf16[8,2,32], index: 0, kind: input, shape index: {}]   ;;  %s2534_s1 = inlined_call_operand.hbm [shape: bf16[32,128], index: 1, kind: input, shape index: {}]   ;;  %s2535_s2 = inlined_call_operand.hbm [shape: bf16[32,128], index: 2, kind: input, shape index: {}]   ;;  %s2536_s3 = inlined_call_operand.vmem [shape: f32[1,128], index: 3, kind: input, shape index: {}]   ;;  %s2537_s4 = inlined_call_operand.hbm [shape: bf16[2,8,32], index: 4, kind: output, shape index: {}]  }
   0x1   :  { %10 = vsyncpa [#allocation8], 0 }
   0x2   :  { %11 = vsyncpa [#allocation6], 0  ;;  %s2117_s15 = smov [#allocation7]   ;;  %s2023_s19 = scalar_lea.hbm %s2534_s1, 256 }
   0x3   :  { %s29_s16 = sshll.u32 %s2117_s15, 4  ;;  %p2024_p0 = scmp.ne.s32.totalorder %s2534_s1, %s2023_s19  ;;  %s30_s16 = int_to_ptr.vmem [resolvable:$true] %s29_s16 }
   0x4   :  { %p2027_p1 = scmp.lt.u32.totalorder %s2023_s19, %s2534_s1 }
   0x6   :  { %p2029_p2 = pnand %p2027_p1, %p2024_p0 }
   0x8   :  { %2032 = shalt.err (!%p2029_p2)
}
   0x9   :  { %s2033_s24 = scalar_lea.vmem %s30_s16, 256  ;;  %p2038_p4 = scmp.lt.s32.totalorder %s30_s16, %s30_s16 }
   0xa   :  { %p2034_p3 = scmp.ne.s32.totalorder %s30_s16, %s2033_s24  ;;  %p2039_p5 = scmp.lt.s32.totalorder %s2033_s24, %s2033_s24 }
   0xc   :  { %p2040_p6 = por %p2039_p5, %p2038_p4 }
   0xe   :  { %p2041_p7 = pnand %p2040_p6, %p2034_p3 }
  0x10   :  { %2044 = shalt.err (!%p2041_p7)
}
  0x11   :  { %s2118_s25 = smov 64   ;;  %s2119_s26 = smov 4  }
  0x12   :  { %35 = dma.hbm_to_vmem [thread:$0]  %s2534_s1, 256, %s30_s16, [#allocation8], %s2118_s25, %s2118_s25, %s2119_s26  }
  0x13   :  { %s2120_s29 = smov [#allocation4]   ;;  %s2045_s7 = scalar_lea.hbm %s2533_s0, 128 }
  0x14   :  { %s17_s30 = sshll.u32 %s2120_s29, 4  ;;  %p2046_p8 = scmp.ne.s32.totalorder %s2533_s0, %s2045_s7  ;;  %s18_s30 = int_to_ptr.vmem [resolvable:$true] %s17_s30 }
  0x15   :  { %p2049_p9 = scmp.lt.u32.totalorder %s2045_s7, %s2533_s0 }
  0x17   :  { %p2051_p10 = pnand %p2049_p9, %p2046_p8 }
  0x19   :  { %2054 = shalt.err (!%p2051_p10)
}
  0x1a   :  { %s2055_s12 = scalar_lea.vmem %s18_s30, 128  ;;  %p2060_p12 = scmp.lt.s32.totalorder %s18_s30, %s18_s30 }
  0x1b   :  { %p2056_p11 = scmp.ne.s32.totalorder %s18_s30, %s2055_s12  ;;  %p2061_p13 = scmp.lt.s32.totalorder %s2055_s12, %s2055_s12 }
  0x1d   :  { %p2062_p0 = por %p2061_p13, %p2060_p12 }
  0x1f   :  { %p2063_p1 = pnand %p2062_p0, %p2056_p11 }
  0x21   :  { %2066 = shalt.err (!%p2063_p1)
}
  0x22   :  { %s2121_s1 = smov 16   ;;  %s2122_s13 = smov 1  }
  0x23   :  { %23 = dma.hbm_to_vmem [thread:$0]  %s2533_s0, 128, %s18_s30, [#allocation5], %s2121_s1, %s2121_s1, %s2122_s13  }
  0x24   :  { %s2123_s16 = smov [#allocation9]   ;;  %s2067_s20 = scalar_lea.hbm %s2535_s2, 256 }
  0x25   :  { %s41_s17 = sshll.u32 %s2123_s16, 4  ;;  %p2068_p2 = scmp.ne.s32.totalorder %s2535_s2, %s2067_s20  ;;  %s42_s17 = int_to_ptr.vmem [resolvable:$true] %s41_s17 }
  0x26   :  { %p2071_p3 = scmp.lt.u32.totalorder %s2067_s20, %s2535_s2 }
  0x28   :  { %p2073_p4 = pnand %p2071_p3, %p2068_p2 }
  0x2a   :  { %2076 = shalt.err (!%p2073_p4)
}
  0x2b   :  { %s2077_s27 = scalar_lea.vmem %s42_s17, 256  ;;  %p2082_p6 = scmp.lt.s32.totalorder %s42_s17, %s42_s17 }
  0x2c   :  { %p2078_p5 = scmp.ne.s32.totalorder %s42_s17, %s2077_s27  ;;  %p2083_p7 = scmp.lt.s32.totalorder %s2077_s27, %s2077_s27 }
  0x2e   :  { %p2084_p8 = por %p2083_p7, %p2082_p6 }
  0x30   :  { %p2085_p9 = pnand %p2084_p8, %p2078_p5 }
  0x32   :  { %2088 = shalt.err (!%p2085_p9)
}
  0x33   :  { %47 = dma.hbm_to_vmem [thread:$0]  %s2535_s2, 256, %s42_s17, [#allocation8], %s2118_s25, %s2118_s25, %s2119_s26  }
  0x34   :  { %2111 = dma.done.wait [#allocation5], 128  }
  0x35   :  { %2112 = vsyncadd [#allocation5], 4294967168 }
  0x36   :  { %2113 = dma.done.wait [#allocation8], 512  }
  0x37   :  { %2114 = vsyncadd [#allocation8], 4294966784  ;;  %vm64_vm0 = vcmask 254976   ;;  %v2124_v0 = vmov 0.0   ;;  %vm2125_vm1 = vmmov 0   ;;  %v1927_v1 = vld [vmem:[#allocation9] sm:$0xff]  }
  0x38   :  { %1785 = vmatprep.subr.bf16.mxu0 %v2124_v0  ;;  %1793 = vmatprep.subr.bf16.mxu1 %v2124_v0  ;;  %65 = vst.msk [vmem:[#allocation2] sm:$0x3] %vm64_vm0, %v2124_v0  ;;  %66 = vst.msk [vmem:[#allocation3] sm:$0x3] %vm64_vm0, %v2124_v0  ;;  %v1928_v2 = vld [vmem:[#allocation7] sm:$0xff]   ;;  %v1929_v3 = vld [vmem:[#allocation9 + $0x8] sm:$0xff]  }
  0x39   :  { %1789 = vmatprep.mubr.msk.bf16.mxu0 %vm2125_vm1, %v2124_v0  ;;  %1797 = vmatprep.mubr.msk.bf16.mxu1 %vm2125_vm1, %v2124_v0  ;;  %v1930_v4 = vld [vmem:[#allocation7 + $0x8] sm:$0xff]   ;;  %vm92_vm2 = vcmask 261120   ;;  %v70_v7 = vld [vmem:[#allocation4] sm:$0x1]  ;;  %v2221_v9 = vld [vmem:[%s2536_s3] ss:$0 sm:$0xff] }
  0x3a   :  { %1786 = vmatpush3.bf16.msra.mxu0 %v1927_v1  ;;  %1794 = vmatpush3.bf16.msra.mxu1 %v1928_v2  ;;  %s2126_s30 = smov 32   ;;  %v1931_v31 = vld [vmem:[#allocation7] sm:$0xff]   ;;  %v1932_v32 = vld [vmem:[#allocation9] sm:$0xff]   ;;  %v1933_v33 = vld [vmem:[#allocation7 + $0x8] sm:$0xff]   ;;  %vm266_vm3 = vcmask 253952   ;;  %vm657_vm6 = vcmask 254977  }
  0x3b   :  { %1787 = vmatprep.subr.bf16.mxu0 %v2124_v0  ;;  %1795 = vmatprep.subr.bf16.mxu1 %v2124_v0  ;;  %v1934_v34 = vld [vmem:[#allocation9 + $0x8] sm:$0xff]   ;;  %v1935_v61 = vld [vmem:[#allocation7] sm:$0xff]   ;;  %v1936_v62 = vld [vmem:[#allocation9] sm:$0xff]   ;;  %vm267_vm4 = vsmask.f32 256  ;;  %vm1048_vm9 = vcmask 256002  }
  0x3c   :  { %v276_v36 = vld [vmem:[#allocation4 + $0x1] sm:$0x1]  ;;  %v1937_v63 = vld [vmem:[#allocation7 + $0x8] sm:$0xff]   ;;  %vm2421_vm5 = vmand %vm266_vm3, %vm267_vm4  ;;  %vm658_vm7 = vsmask.f32 1280  ;;  %vm1439_vm12 = vcmask 257027  }
  0x3d   :  { %v1938_v1 = vld [vmem:[#allocation9 + $0x8] sm:$0xff]   ;;  %vm2429_vm8 = vmand %vm657_vm6, %vm658_vm7  ;;  %vm1049_vm10 = vsmask.f32 2304  ;;  %vm1440_vm13 = vsmask.f32 3328  ;;  %s2129_s3 = smov 96  }
  0x3e   :  { %1788 = vmatpush3.bf16.msra.mxu0 %v1929_v3  ;;  %1796 = vmatpush3.bf16.msra.mxu1 %v1930_v4  ;;  %v471_v3 = vld [vmem:[#allocation4 + $0x2] sm:$0x1]  ;;  %vm2437_vm11 = vmand %vm1048_vm9, %vm1049_vm10  ;;  %vm462_vm15 = vsmask.f32 7938  ;;  %s2130_s5 = smov [#allocation10]  }
  0x3f   :  { %v68_v5 = vld [vmem:[#allocation2] sm:$0x3]  ;;  %1801 = vmatprep.subr.bf16.mxu0 %v2124_v0  ;;  %1809 = vmatprep.subr.bf16.mxu1 %v2124_v0  ;;  %v69_v20 = vld [vmem:[#allocation3] sm:$0x3]  ;;  %vm2446_vm14 = vmand %vm1439_vm12, %vm1440_vm13  ;;  %s1659_s6 = sshll.u32 %s2130_s5, 4  ;;  %s1660_s6 = int_to_ptr.vmem [resolvable:$true] %s1659_s6 }
  0x40   :  { %v75_v6 = vpack.c.bf16 %v68_v5, %v68_v5  ;;  %s2089_s7 = scalar_lea.vmem %s1660_s6, 128  ;;  %p2094_p11 = scmp.lt.s32.totalorder %s1660_s6, %s1660_s6 }
  0x41   :  { %1798 = vmatmul.mubr.msk.bf16.vlgmr.msra.gmra.mrb[0].mxu1 %vm92_vm2, %v70_v7  ;;  %p2090_p10 = scmp.ne.s32.totalorder %s1660_s6, %s2089_s7  ;;  %p2095_p12 = scmp.lt.s32.totalorder %s2089_s7, %s2089_s7 }
  0x42   :  { %1790 = vmatmul.mubr.msk.bf16.vlgmr.msra.gmra.mrb[0].mxu0 %vm92_vm2, %v75_v6  ;;  %1813 = vmatprep.mubr.msk.bf16.mxu1 %vm2125_vm1, %v2124_v0 }
  0x43   :  { %1805 = vmatprep.mubr.msk.bf16.mxu0 %vm2125_vm1, %v2124_v0  ;;  %1810 = vmatpush3.bf16.msra.mxu1 %v1931_v31  ;;  %v1941_v31 = vld [vmem:[#allocation7 + $0x8] sm:$0xff]   ;;  %p2096_p13 = por %p2095_p12, %p2094_p11 }
  0x44   :  { %1802 = vmatpush3.bf16.msra.mxu0 %v1932_v32  ;;  %1811 = vmatprep.subr.bf16.mxu1 %v2124_v0  ;;  %v1942_v32 = vld [vmem:[#allocation9 + $0x8] sm:$0xff]  }
  0x45   :  { %1803 = vmatprep.subr.bf16.mxu0 %v2124_v0  ;;  %p2097_p0 = pnand %p2096_p13, %p2090_p10 }
  0x47   :  { %1812 = vmatpush3.bf16.msra.mxu1 %v1933_v33 }
  0x48   :  { %1804 = vmatpush3.bf16.msra.mxu0 %v1934_v34  ;;  %1825 = vmatprep.subr.bf16.mxu1 %v2124_v0  ;;  %v667_v34 = vld [vmem:[#allocation4 + $0x3] sm:$0x1] }
  0x49   :  { %1817 = vmatprep.subr.bf16.mxu0 %v2124_v0 }
  0x4a   :  { %1814 = vmatmul.mubr.msk.bf16.vlgmr.msra.gmra.mrb[4].mxu1 %vm92_vm2, %v276_v36 }
  0x4b   :  { %1829 = vmatprep.mubr.msk.bf16.mxu1 %vm2125_vm1, %v2124_v0  ;;  %1826 = vmatpush3.bf16.msra.mxu1 %v1935_v61  ;;  %v1944_v61 = vld [vmem:[#allocation9] sm:$0xff]  }
  0x4c   :  { %1827 = vmatprep.subr.bf16.mxu1 %v2124_v0 }
  0x4f   :  { %1828 = vmatpush3.bf16.msra.mxu1 %v1937_v63  ;;  %v1946_v63 = vld [vmem:[#allocation9 + $0x8] sm:$0xff]  }
  0x50   :  { %1841 = vmatprep.subr.bf16.mxu1 %v2124_v0 }
  0x52   :  { %1830 = vmatmul.mubr.msk.bf16.vlgmr.msra.gmra.mrb[8].mxu1 %vm92_vm2, %v471_v3 }
  0x53   :  { %1845 = vmatprep.mubr.msk.bf16.mxu1 %vm2125_vm1, %v2124_v0 }
 0x114   :  { %v185_v10 = vpop.f32.mrb[0].mxu1 }
 0x115   :  { %v130_v8 = vpop.f32.mrb[0].mxu0  ;;  %v1799_v13 = vpop.f32.mrb[1].mxu1 }
 0x116   :  { %v1791_v11 = vpop.f32.mrb[1].mxu0  ;;  %v186_v12 = vadd.f32 %v185_v10, %v130_v8  ;;  %v188_v15 = vpop.f32.mrb[2].mxu1 }
 0x117   :  { %v133_v14 = vpop.f32.mrb[2].mxu0  ;;  %v1800_v18 = vpop.f32.mrb[3].mxu1 }
 0x118   :  { %v1792_v16 = vpop.f32.mrb[3].mxu0  ;;  %v197_v17 = vadd.f32 %v2221_v9, %v186_v12 }
 0x11a   :  { %1959 = vtanh.f32 %v197_v17  ;;  %v1679_v21 = vmul.f32 -1.442695, %v197_v17 }
 0x11c   :  { %1961 = vpow2.f32 %v1679_v21 }
 0x11d   :  { %v391_v40 = vpop.f32.mrb[4].mxu1 }
 0x11e   :  { %v1815_v41 = vpop.f32.mrb[5].mxu1 }
 0x11f   :  { %v394_v42 = vpop.f32.mrb[6].mxu1 }
 0x120   :  { %v1816_v43 = vpop.f32.mrb[7].mxu1 }
 0x124   :  { %v1960_v19 = vpop.eup %1959 }
 0x125   :  { %211 = vrot.lane.b32.xlu0 %v1960_v19, %s2118_s25  ;;  %v586_v7 = vpop.f32.mrb[8].mxu1 }
 0x126   :  { %v1962_v22 = vpop.eup %1961  ;;  %v1831_v8 = vpop.f32.mrb[9].mxu1 }
 0x127   :  { %v201_v23 = vadd.f32 1.0, %v1962_v22  ;;  %v589_v10 = vpop.f32.mrb[10].mxu1 }
 0x128   :  { %v1832_v11 = vpop.f32.mrb[11].mxu1 }
 0x129   :  { %206 = vrot.lane.b32.xlu0 %v69_v20, %s2126_s30  ;;  %1963 = vrcp.f32 %v201_v23 }
 0x133   :  { %v1964_v24 = vpop.eup %1963 }
 0x197   :  { %v212_v25 = vpop.permute.xlu0 %211 }
 0x198   :  { %v214_v26 = vmul.f32 %v1964_v24, %v212_v25 }
 0x19a   :  { %216 = vrot.lane.b32.xlu1 %v214_v26, %s2126_s30 }
 0x19b   :  { %v207_v27 = vpop.permute.xlu0 %206 }
 0x19c   :  { %v209_v28 = vmul.f32 %v1964_v24, %v207_v27 }
 0x20c   :  { %v217_v29 = vpop.permute.xlu1 %216 }
 0x20d   :  { %v219_v30 = vadd.f32 %v217_v29, %v209_v28  ;;  %v1939_v29 = vld [vmem:[#allocation7] sm:$0xff]  }
 0x20e   :  { %1842 = vmatpush3.bf16.msra.mxu1 %v1939_v29  ;;  %v1947_v29 = vld [vmem:[#allocation7] sm:$0xff]  }
 0x20f   :  { %1965 = vtanh.f32 %v219_v30  ;;  %1843 = vmatprep.subr.bf16.mxu1 %v2124_v0 }
 0x212   :  { %1844 = vmatpush3.bf16.msra.mxu1 %v1941_v31  ;;  %v1949_v31 = vld [vmem:[#allocation7 + $0x8] sm:$0xff]  }
 0x213   :  { %1857 = vmatprep.subr.bf16.mxu1 %v2124_v0 }
 0x215   :  { %1846 = vmatmul.mubr.msk.bf16.vlgmr.msra.gmra.mrb[12].mxu1 %vm92_vm2, %v667_v34  ;;  %v1058_v34 = vld [vmem:[#allocation4 + $0x5] sm:$0x1] }
 0x216   :  { %1861 = vmatprep.mubr.msk.bf16.mxu1 %vm2125_vm1, %v2124_v0 }
 0x219   :  { %v1966_v35 = vpop.eup %1965 }
 0x21a   :  { %222 = vrot.lane.b32.xlu1 %v1966_v35, %s2118_s25 }
 0x28c   :  { %v223_v37 = vpop.permute.xlu1 %222 }
 0x28d   :  { %v225_v38 = vmul.f32 %v1964_v24, %v223_v37 }
 0x28f   :  { %v2235_v39 = vpack.c.bf16 %v225_v38, %v225_v38 }
 0x291   :  { %285 = vrot.lane.b32.xlu0 %v2235_v39, %s2126_s30 }
 0x2e8   :  { %v782_v38 = vpop.f32.mrb[12].mxu1 }
 0x303   :  { %v286_v44 = vpop.permute.xlu0 %285 }
 0x304   :  { %1806 = vmatmul.mubr.msk.bf16.vlgmr.msra.gmra.mrb[4].mxu0 %vm92_vm2, %v286_v44 }
 0x305   :  { %1821 = vmatprep.mubr.msk.bf16.mxu0 %vm2125_vm1, %v2124_v0  ;;  %1818 = vmatpush3.bf16.msra.mxu0 %v1936_v62  ;;  %v1945_v62 = vld [vmem:[#allocation7 + $0x8] sm:$0xff]  }
 0x306   :  { %1819 = vmatprep.subr.bf16.mxu0 %v2124_v0 }
 0x309   :  { %1820 = vmatpush3.bf16.msra.mxu0 %v1938_v1 }
 0x30a   :  { %1833 = vmatprep.subr.bf16.mxu0 %v2124_v0 }
 0x3d7   :  { %v336_v45 = vpop.f32.mrb[4].mxu0 }
 0x3d8   :  { %v392_v46 = vadd.f32 %v391_v40, %v336_v45  ;;  %v1807_v47 = vpop.f32.mrb[5].mxu0  ;;  %v1847_v40 = vpop.f32.mrb[13].mxu1 }
 0x3d9   :  { %v339_v48 = vpop.f32.mrb[6].mxu0  ;;  %v785_v41 = vpop.f32.mrb[14].mxu1 }
 0x3da   :  { %v397_v49 = vadd.f32 %v2221_v9, %v392_v46  ;;  %v1808_v50 = vpop.f32.mrb[7].mxu0  ;;  %v1848_v42 = vpop.f32.mrb[15].mxu1 }
 0x3dc   :  { %1967 = vtanh.f32 %v397_v49  ;;  %v1687_v52 = vmul.f32 -1.442695, %v397_v49 }
 0x3de   :  { %1969 = vpow2.f32 %v1687_v52 }
 0x3e6   :  { %v1968_v51 = vpop.eup %1967 }
 0x3e7   :  { %407 = vrot.lane.b32.xlu1 %v1968_v51, %s2118_s25 }
 0x3e8   :  { %v1970_v53 = vpop.eup %1969 }
 0x3e9   :  { %v401_v54 = vadd.f32 1.0, %v1970_v53 }
 0x3eb   :  { %1971 = vrcp.f32 %v401_v54 }
 0x3f5   :  { %v1972_v55 = vpop.eup %1971 }
 0x3f6   :  { %v405_v58 = vmul.f32 %v1972_v55, %v219_v30  ;;  %v1940_v30 = vld [vmem:[#allocation9] sm:$0xff]  }
 0x459   :  { %v408_v56 = vpop.permute.xlu1 %407 }
 0x45a   :  { %v410_v57 = vmul.f32 %v1972_v55, %v408_v56 }
 0x45c   :  { %412 = vrot.lane.b32.xlu0 %v410_v57, %s2126_s30 }
 0x4ce   :  { %v413_v59 = vpop.permute.xlu0 %412 }
 0x4cf   :  { %v415_v60 = vadd.f32 %v413_v59, %v405_v58 }
 0x4d1   :  { %1973 = vtanh.f32 %v415_v60 }
 0x4db   :  { %v1974_v2 = vpop.eup %1973 }
 0x4dc   :  { %418 = vrot.lane.b32.xlu1 %v1974_v2, %s2118_s25  ;;  %v862_v2 = vld [vmem:[#allocation4 + $0x4] sm:$0x1] }
 0x54e   :  { %v419_v4 = vpop.permute.xlu1 %418 }
 0x54f   :  { %v421_v5 = vmul.f32 %v1972_v55, %v419_v4 }
 0x551   :  { %v2253_v6 = vpack.c.bf16 %v421_v5, %v421_v5 }
 0x553   :  { %480 = vrot.lane.b32.xlu0 %v2253_v6, %s2126_s30 }
 0x5c5   :  { %v481_v12 = vpop.permute.xlu0 %480 }
 0x5c6   :  { %1822 = vmatmul.mubr.msk.bf16.vlgmr.msra.gmra.mrb[8].mxu0 %vm92_vm2, %v481_v12 }
 0x5c7   :  { %1837 = vmatprep.mubr.msk.bf16.mxu0 %vm2125_vm1, %v2124_v0  ;;  %1834 = vmatpush3.bf16.msra.mxu0 %v1940_v30  ;;  %v1948_v30 = vld [vmem:[#allocation9] sm:$0xff]  }
 0x5c8   :  { %1835 = vmatprep.subr.bf16.mxu0 %v2124_v0 }
 0x5cb   :  { %1836 = vmatpush3.bf16.msra.mxu0 %v1942_v32  ;;  %v1950_v32 = vld [vmem:[#allocation9 + $0x8] sm:$0xff]  }
 0x5cc   :  { %1849 = vmatprep.subr.bf16.mxu0 %v2124_v0 }
 0x699   :  { %v531_v13 = vpop.f32.mrb[8].mxu0 }
 0x69a   :  { %v587_v14 = vadd.f32 %v586_v7, %v531_v13  ;;  %v1823_v15 = vpop.f32.mrb[9].mxu0 }
 0x69b   :  { %v534_v16 = vpop.f32.mrb[10].mxu0 }
 0x69c   :  { %v592_v17 = vadd.f32 %v2221_v9, %v587_v14  ;;  %v1824_v18 = vpop.f32.mrb[11].mxu0 }
 0x69e   :  { %1975 = vtanh.f32 %v592_v17  ;;  %v1695_v20 = vmul.f32 -1.442695, %v592_v17 }
 0x6a0   :  { %1977 = vpow2.f32 %v1695_v20 }
 0x6a8   :  { %v1976_v19 = vpop.eup %1975 }
 0x6a9   :  { %602 = vrot.lane.b32.xlu1 %v1976_v19, %s2118_s25 }
 0x6aa   :  { %v1978_v21 = vpop.eup %1977 }
 0x6ab   :  { %v596_v22 = vadd.f32 1.0, %v1978_v21 }
 0x6ad   :  { %1979 = vrcp.f32 %v596_v22 }
 0x6b7   :  { %v1980_v23 = vpop.eup %1979 }
 0x6b8   :  { %v600_v26 = vmul.f32 %v1980_v23, %v415_v60  ;;  %v1943_v60 = vld [vmem:[#allocation7] sm:$0xff]  }
 0x6b9   :  { %1858 = vmatpush3.bf16.msra.mxu1 %v1943_v60 }
 0x6ba   :  { %1859 = vmatprep.subr.bf16.mxu1 %v2124_v0 }
 0x6bd   :  { %1860 = vmatpush3.bf16.msra.mxu1 %v1945_v62  ;;  %v1952_v62 = vld [vmem:[#allocation9] sm:$0xff]  }
 0x6be   :  { %1873 = vmatprep.subr.bf16.mxu1 %v2124_v0 }
 0x6c0   :  { %1862 = vmatmul.mubr.msk.bf16.vlgmr.msra.gmra.mrb[16].mxu1 %vm92_vm2, %v862_v2 }
 0x6c1   :  { %1877 = vmatprep.mubr.msk.bf16.mxu1 %vm2125_vm1, %v2124_v0  ;;  %1874 = vmatpush3.bf16.msra.mxu1 %v1947_v29 }
 0x6c2   :  { %1875 = vmatprep.subr.bf16.mxu1 %v2124_v0 }
 0x6c5   :  { %1876 = vmatpush3.bf16.msra.mxu1 %v1949_v31  ;;  %v1955_v31 = vld [vmem:[#allocation7] sm:$0xff]  }
 0x6c6   :  { %1889 = vmatprep.subr.bf16.mxu1 %v2124_v0 }
 0x6c8   :  { %1878 = vmatmul.mubr.msk.bf16.vlgmr.msra.gmra.mrb[20].mxu1 %vm92_vm2, %v1058_v34  ;;  %v1958_v34 = vld [vmem:[#allocation9 + $0x8] sm:$0xff]  }
 0x6c9   :  { %1893 = vmatprep.mubr.msk.bf16.mxu1 %vm2125_vm1, %v2124_v0 }
 0x71b   :  { %v603_v24 = vpop.permute.xlu1 %602 }
 0x71c   :  { %v605_v25 = vmul.f32 %v1980_v23, %v603_v24 }
 0x71e   :  { %607 = vrot.lane.b32.xlu0 %v605_v25, %s2126_s30 }
 0x790   :  { %v608_v27 = vpop.permute.xlu0 %607 }
 0x791   :  { %v610_v28 = vadd.f32 %v608_v27, %v600_v26 }
 0x793   :  { %1981 = vtanh.f32 %v610_v28  ;;  %v977_v7 = vpop.f32.mrb[16].mxu1 }
 0x794   :  { %v1863_v8 = vpop.f32.mrb[17].mxu1 }
 0x795   :  { %v980_v10 = vpop.f32.mrb[18].mxu1 }
 0x796   :  { %v1864_v11 = vpop.f32.mrb[19].mxu1 }
 0x79b   :  { %v1173_v40 = vpop.f32.mrb[20].mxu1 }
 0x79c   :  { %v1879_v41 = vpop.f32.mrb[21].mxu1 }
 0x79d   :  { %v1982_v33 = vpop.eup %1981  ;;  %v1176_v42 = vpop.f32.mrb[22].mxu1 }
 0x79e   :  { %613 = vrot.lane.b32.xlu1 %v1982_v33, %s2118_s25 }
 0x810   :  { %v614_v35 = vpop.permute.xlu1 %613 }
 0x811   :  { %v616_v36 = vmul.f32 %v1980_v23, %v614_v35 }
 0x813   :  { %v2271_v37 = vpack.c.bf16 %v616_v36, %v616_v36 }
 0x815   :  { %676 = vrot.lane.b32.xlu0 %v2271_v37, %s2126_s30 }
 0x887   :  { %v677_v43 = vpop.permute.xlu0 %676 }
 0x888   :  { %1838 = vmatmul.mubr.msk.bf16.vlgmr.msra.gmra.mrb[12].mxu0 %vm92_vm2, %v677_v43  ;;  %v1880_v43 = vpop.f32.mrb[23].mxu1 }
 0x889   :  { %1853 = vmatprep.mubr.msk.bf16.mxu0 %vm2125_vm1, %v2124_v0  ;;  %1850 = vmatpush3.bf16.msra.mxu0 %v1944_v61  ;;  %v1951_v61 = vld [vmem:[#allocation7] sm:$0xff]  }
 0x88a   :  { %1851 = vmatprep.subr.bf16.mxu0 %v2124_v0  ;;  %1890 = vmatpush3.bf16.msra.mxu1 %v1951_v61 }
 0x88b   :  { %1891 = vmatprep.subr.bf16.mxu1 %v2124_v0 }
 0x88d   :  { %1852 = vmatpush3.bf16.msra.mxu0 %v1946_v63  ;;  %v1953_v63 = vld [vmem:[#allocation7 + $0x8] sm:$0xff]  }
 0x88e   :  { %1865 = vmatprep.subr.bf16.mxu0 %v2124_v0  ;;  %1892 = vmatpush3.bf16.msra.mxu1 %v1953_v63  ;;  %v2128_v63 = vmov 286326784  }
 0x88f   :  { %1905 = vmatprep.subr.bf16.mxu1 %v2124_v0 }
 0x95b   :  { %v727_v44 = vpop.f32.mrb[12].mxu0 }
 0x95c   :  { %v783_v45 = vadd.f32 %v782_v38, %v727_v44  ;;  %v1839_v46 = vpop.f32.mrb[13].mxu0 }
 0x95d   :  { %v730_v47 = vpop.f32.mrb[14].mxu0 }
 0x95e   :  { %v788_v48 = vadd.f32 %v2221_v9, %v783_v45  ;;  %v1840_v49 = vpop.f32.mrb[15].mxu0 }
 0x960   :  { %1983 = vtanh.f32 %v788_v48  ;;  %v1703_v51 = vmul.f32 -1.442695, %v788_v48 }
 0x962   :  { %1985 = vpow2.f32 %v1703_v51 }
 0x96a   :  { %v1984_v50 = vpop.eup %1983 }
 0x96b   :  { %798 = vrot.lane.b32.xlu1 %v1984_v50, %s2118_s25 }
 0x96c   :  { %v1986_v52 = vpop.eup %1985 }
 0x96d   :  { %v792_v53 = vadd.f32 1.0, %v1986_v52 }
 0x96f   :  { %1987 = vrcp.f32 %v792_v53 }
 0x979   :  { %v1988_v54 = vpop.eup %1987 }
 0x97a   :  { %v796_v57 = vmul.f32 %v1988_v54, %v610_v28 }
 0x9dd   :  { %v799_v55 = vpop.permute.xlu1 %798 }
 0x9de   :  { %v801_v56 = vmul.f32 %v1988_v54, %v799_v55 }
 0x9e0   :  { %803 = vrot.lane.b32.xlu0 %v801_v56, %s2126_s30 }
 0xa52   :  { %v804_v58 = vpop.permute.xlu0 %803 }
 0xa53   :  { %v806_v59 = vadd.f32 %v804_v58, %v796_v57 }
 0xa55   :  { %1989 = vtanh.f32 %v806_v59 }
 0xa5f   :  { %v1990_v1 = vpop.eup %1989 }
 0xa60   :  { %809 = vrot.lane.b32.xlu1 %v1990_v1, %s2118_s25  ;;  %v1954_v1 = vld [vmem:[#allocation9 + $0x8] sm:$0xff]  }
 0xad2   :  { %v810_v3 = vpop.permute.xlu1 %809 }
 0xad3   :  { %v812_v4 = vmul.f32 %v1988_v54, %v810_v3  ;;  %v1253_v3 = vld [vmem:[#allocation4 + $0x6] sm:$0x1] }
 0xad4   :  { %1894 = vmatmul.mubr.msk.bf16.vlgmr.msra.gmra.mrb[24].mxu1 %vm92_vm2, %v1253_v3 }
 0xad5   :  { %v2289_v5 = vpack.c.bf16 %v812_v4, %v812_v4  ;;  %1909 = vmatprep.mubr.msk.bf16.mxu1 %vm2125_vm1, %v2124_v0  ;;  %1906 = vmatpush3.bf16.msra.mxu1 %v1955_v31 }
 0xad6   :  { %1907 = vmatprep.subr.bf16.mxu1 %v2124_v0 }
 0xad7   :  { %871 = vrot.lane.b32.xlu0 %v2289_v5, %s2126_s30 }
 0xb49   :  { %v872_v12 = vpop.permute.xlu0 %871 }
 0xb4a   :  { %1854 = vmatmul.mubr.msk.bf16.vlgmr.msra.gmra.mrb[16].mxu0 %vm92_vm2, %v872_v12 }
 0xb4b   :  { %1869 = vmatprep.mubr.msk.bf16.mxu0 %vm2125_vm1, %v2124_v0  ;;  %1866 = vmatpush3.bf16.msra.mxu0 %v1948_v30 }
 0xb4c   :  { %1867 = vmatprep.subr.bf16.mxu0 %v2124_v0 }
 0xb4f   :  { %1868 = vmatpush3.bf16.msra.mxu0 %v1950_v32  ;;  %v1956_v32 = vld [vmem:[#allocation9] sm:$0xff]  }
 0xb50   :  { %1881 = vmatprep.subr.bf16.mxu0 %v2124_v0 }
 0xba7   :  { %v1368_v10 = vpop.f32.mrb[24].mxu1 }
 0xba8   :  { %v1895_v11 = vpop.f32.mrb[25].mxu1 }
 0xba9   :  { %v1371_v12 = vpop.f32.mrb[26].mxu1 }
 0xc1d   :  { %v922_v13 = vpop.f32.mrb[16].mxu0 }
 0xc1e   :  { %v978_v14 = vadd.f32 %v977_v7, %v922_v13  ;;  %v1855_v15 = vpop.f32.mrb[17].mxu0  ;;  %v1896_v13 = vpop.f32.mrb[27].mxu1 }
 0xc1f   :  { %v925_v16 = vpop.f32.mrb[18].mxu0 }
 0xc20   :  { %v983_v17 = vadd.f32 %v2221_v9, %v978_v14  ;;  %v1856_v18 = vpop.f32.mrb[19].mxu0 }
 0xc22   :  { %1991 = vtanh.f32 %v983_v17  ;;  %v1711_v20 = vmul.f32 -1.442695, %v983_v17 }
 0xc24   :  { %1993 = vpow2.f32 %v1711_v20 }
 0xc2c   :  { %v1992_v19 = vpop.eup %1991 }
 0xc2d   :  { %993 = vrot.lane.b32.xlu1 %v1992_v19, %s2118_s25 }
 0xc2e   :  { %v1994_v21 = vpop.eup %1993 }
 0xc2f   :  { %v987_v22 = vadd.f32 1.0, %v1994_v21 }
 0xc31   :  { %1995 = vrcp.f32 %v987_v22 }
 0xc3b   :  { %v1996_v23 = vpop.eup %1995 }
 0xc3c   :  { %v991_v26 = vmul.f32 %v1996_v23, %v806_v59 }
 0xc9f   :  { %v994_v24 = vpop.permute.xlu1 %993 }
 0xca0   :  { %v996_v25 = vmul.f32 %v1996_v23, %v994_v24 }
 0xca2   :  { %998 = vrot.lane.b32.xlu0 %v996_v25, %s2126_s30 }
 0xd14   :  { %v999_v27 = vpop.permute.xlu0 %998 }
 0xd15   :  { %v1001_v28 = vadd.f32 %v999_v27, %v991_v26 }
 0xd17   :  { %1997 = vtanh.f32 %v1001_v28 }
 0xd21   :  { %v1998_v33 = vpop.eup %1997 }
 0xd22   :  { %1004 = vrot.lane.b32.xlu1 %v1998_v33, %s2118_s25  ;;  %v1957_v33 = vld [vmem:[#allocation7 + $0x8] sm:$0xff]  }
 0xd23   :  { %1908 = vmatpush3.bf16.msra.mxu1 %v1957_v33 }
 0xd94   :  { %v1005_v35 = vpop.permute.xlu1 %1004 }
 0xd95   :  { %v1007_v36 = vmul.f32 %v1996_v23, %v1005_v35 }
 0xd97   :  { %v2307_v38 = vpack.c.bf16 %v1007_v36, %v1007_v36  ;;  %v1449_v36 = vld [vmem:[#allocation4 + $0x7] sm:$0x1] }
 0xd98   :  { %1910 = vmatmul.mubr.msk.bf16.vlgmr.msra.gmra.mrb[28].mxu1 %vm92_vm2, %v1449_v36 }
 0xd99   :  { %1067 = vrot.lane.b32.xlu0 %v2307_v38, %s2126_s30 }
 0xe0b   :  { %v1068_v44 = vpop.permute.xlu0 %1067 }
 0xe0c   :  { %1870 = vmatmul.mubr.msk.bf16.vlgmr.msra.gmra.mrb[20].mxu0 %vm92_vm2, %v1068_v44 }
 0xe0d   :  { %1885 = vmatprep.mubr.msk.bf16.mxu0 %vm2125_vm1, %v2124_v0  ;;  %1882 = vmatpush3.bf16.msra.mxu0 %v1952_v62 }
 0xe0e   :  { %1883 = vmatprep.subr.bf16.mxu0 %v2124_v0 }
 0xe11   :  { %1884 = vmatpush3.bf16.msra.mxu0 %v1954_v1  ;;  %v247_v1 = vunpack.c.l.s4 %v2128_v63 }
 0xe12   :  { %1897 = vmatprep.subr.bf16.mxu0 %v2124_v0 }
 0xe6b   :  { %v1564_v43 = vpop.f32.mrb[28].mxu1 }
 0xe6c   :  { %v1911_v44 = vpop.f32.mrb[29].mxu1 }
 0xedf   :  { %v1118_v45 = vpop.f32.mrb[20].mxu0 }
 0xee0   :  { %v1174_v46 = vadd.f32 %v1173_v40, %v1118_v45  ;;  %v1871_v47 = vpop.f32.mrb[21].mxu0  ;;  %v1567_v45 = vpop.f32.mrb[30].mxu1 }
 0xee1   :  { %v1121_v48 = vpop.f32.mrb[22].mxu0 }
 0xee2   :  { %v1179_v49 = vadd.f32 %v2221_v9, %v1174_v46  ;;  %v1872_v50 = vpop.f32.mrb[23].mxu0  ;;  %v1912_v46 = vpop.f32.mrb[31].mxu1 }
 0xee4   :  { %1999 = vtanh.f32 %v1179_v49  ;;  %v1719_v52 = vmul.f32 -1.442695, %v1179_v49 }
 0xee6   :  { %2001 = vpow2.f32 %v1719_v52 }
 0xeee   :  { %v2000_v51 = vpop.eup %1999 }
 0xeef   :  { %1189 = vrot.lane.b32.xlu1 %v2000_v51, %s2118_s25 }
 0xef0   :  { %v2002_v53 = vpop.eup %2001 }
 0xef1   :  { %v1183_v54 = vadd.f32 1.0, %v2002_v53 }
 0xef3   :  { %2003 = vrcp.f32 %v1183_v54 }
 0xefd   :  { %v2004_v55 = vpop.eup %2003 }
 0xefe   :  { %v1187_v58 = vmul.f32 %v2004_v55, %v1001_v28 }
 0xf61   :  { %v1190_v56 = vpop.permute.xlu1 %1189 }
 0xf62   :  { %v1192_v57 = vmul.f32 %v2004_v55, %v1190_v56 }
 0xf64   :  { %1194 = vrot.lane.b32.xlu0 %v1192_v57, %s2126_s30  ;;  %v231_v57 = vlaneseq }
 0xfd6   :  { %v1195_v59 = vpop.permute.xlu0 %1194 }
 0xfd7   :  { %v1197_v60 = vadd.f32 %v1195_v59, %v1187_v58 }
 0xfd9   :  { %2005 = vtanh.f32 %v1197_v60 }
 0xfe3   :  { %v2006_v2 = vpop.eup %2005 }
 0xfe4   :  { %1200 = vrot.lane.b32.xlu1 %v2006_v2, %s2118_s25  ;;  %v248_v2 = vunpack.c.0.s8 %v247_v1 }
0x1056   :  { %v1201_v4 = vpop.permute.xlu1 %1200 }
0x1057   :  { %v1203_v7 = vmul.f32 %v2004_v55, %v1201_v4  ;;  %v2127_v55 = vmov 1966171168  }
0x1058   :  { %v229_v56 = vunpack.c.l.s4 %v2127_v55 }
0x1059   :  { %v2325_v8 = vpack.c.bf16 %v1203_v7, %v1203_v7 }
0x105a   :  { %v230_v59 = vunpack.c.0.s8 %v229_v56 }
0x105b   :  { %1262 = vrot.lane.b32.xlu0 %v2325_v8, %s2126_s30 }
0x10cd   :  { %v1263_v14 = vpop.permute.xlu0 %1262 }
0x10ce   :  { %1886 = vmatmul.mubr.msk.bf16.vlgmr.msra.gmra.mrb[24].mxu0 %vm92_vm2, %v1263_v14 }
0x10cf   :  { %1901 = vmatprep.mubr.msk.bf16.mxu0 %vm2125_vm1, %v2124_v0  ;;  %1898 = vmatpush3.bf16.msra.mxu0 %v1956_v32  ;;  %vm2456_vm1 = vmand %vm266_vm3, %vm462_vm15  ;;  %vm1244_vm3 = vsmask.f32 7946 }
0x10d0   :  { %1899 = vmatprep.subr.bf16.mxu0 %v2124_v0  ;;  %vm2476_vm7 = vmand %vm1048_vm9, %vm1244_vm3 }
0x10d3   :  { %1900 = vmatpush3.bf16.msra.mxu0 %v1958_v34 }
0x11a1   :  { %v1313_v15 = vpop.f32.mrb[24].mxu0 }
0x11a2   :  { %v1369_v16 = vadd.f32 %v1368_v10, %v1313_v15  ;;  %v1887_v17 = vpop.f32.mrb[25].mxu0 }
0x11a3   :  { %v1316_v18 = vpop.f32.mrb[26].mxu0 }
0x11a4   :  { %v1374_v19 = vadd.f32 %v2221_v9, %v1369_v16  ;;  %v1888_v20 = vpop.f32.mrb[27].mxu0 }
0x11a6   :  { %2007 = vtanh.f32 %v1374_v19  ;;  %v1727_v22 = vmul.f32 -1.442695, %v1374_v19 }
0x11a8   :  { %2009 = vpow2.f32 %v1727_v22 }
0x11b0   :  { %v2008_v21 = vpop.eup %2007 }
0x11b1   :  { %1384 = vrot.lane.b32.xlu1 %v2008_v21, %s2118_s25 }
0x11b2   :  { %v2010_v23 = vpop.eup %2009 }
0x11b3   :  { %v1378_v24 = vadd.f32 1.0, %v2010_v23 }
0x11b5   :  { %2011 = vrcp.f32 %v1378_v24 }
0x11bf   :  { %v2012_v25 = vpop.eup %2011 }
0x11c0   :  { %v1382_v28 = vmul.f32 %v2012_v25, %v1197_v60  ;;  %v232_v60 = vshrl.u32 %v231_v57, 7 }
0x11c2   :  { %v2346_v62 = vsub.s32 %v230_v59, %v232_v60  ;;  %v2357_v11 = vsub.s32 %v248_v2, %v232_v60 }
0x11c4   :  { %v625_v4 = vrot.slane %v2271_v37, %v2346_v62  ;;  %v1016_v13 = vrot.slane %v2307_v38, %v2346_v62  ;;  %v430_v38 = vrot.slane %v2253_v6, %v2346_v62  ;;  %v821_v22 = vrot.slane %v2289_v5, %v2346_v62 }
0x11c6   :  { %v2360_v12 = vrot.slane %v625_v4, %v2346_v62  ;;  %v2369_v37 = vrot.slane %v1016_v13, %v2346_v62  ;;  %v2386_v21 = vrot.slane %v430_v38, %v2346_v62  ;;  %v2395_v24 = vrot.slane %v821_v22, %v2346_v62 }
0x11c8   :  { %v1696_v17 = vpack.i.b16 %v2360_v12, %v2360_v12  ;;  %v1712_v20 = vpack.i.b16 %v2369_v37, %v2369_v37 }
0x11ca   :  { %v643_v19 = vrot.slane %v1696_v17, %v2357_v11  ;;  %v1034_v23 = vrot.slane %v1712_v20, %v2357_v11 }
0x1223   :  { %v1385_v26 = vpop.permute.xlu1 %1384 }
0x1224   :  { %v1387_v27 = vmul.f32 %v2012_v25, %v1385_v26 }
0x1226   :  { %1389 = vrot.lane.b32.xlu0 %v1387_v27, %s2126_s30  ;;  %v1688_v27 = vpack.i.b16 %v2386_v21, %v2386_v21 }
0x1298   :  { %v1390_v29 = vpop.permute.xlu0 %1389 }
0x1299   :  { %v2335_v30 = vadd.f32 %v1390_v29, %v1382_v28  ;;  %v448_v28 = vrot.slane %v1688_v27, %v2357_v11  ;;  %v1704_v29 = vpack.i.b16 %v2395_v24, %v2395_v24 }
0x129b   :  { %2013 = vtanh.f32 %v2335_v30  ;;  %v839_v31 = vrot.slane %v1704_v29, %v2357_v11 }
0x12a5   :  { %v2014_v35 = vpop.eup %2013 }
0x12a6   :  { %1395 = vrot.lane.b32.xlu1 %v2014_v35, %s2118_s25 }
0x1318   :  { %v1396_v40 = vpop.permute.xlu1 %1395 }
0x1319   :  { %v1398_v41 = vmul.f32 %v2012_v25, %v1396_v40  ;;  %v1212_v25 = vrot.slane %v2325_v8, %v2346_v62  ;;  %v269_v40 = vld [vmem:[#allocation10] sm:$0x1] }
0x131b   :  { %v1399_v42 = vpack.c.bf16 %v1398_v41, %v1398_v41  ;;  %v2404_v5 = vrot.slane %v1212_v25, %v2346_v62 }
0x131d   :  { %1458 = vrot.lane.b32.xlu0 %v1399_v42, %s2126_s30  ;;  %v1407_v15 = vrot.slane %v1399_v42, %v2346_v62  ;;  %v1720_v8 = vpack.i.b16 %v2404_v5, %v2404_v5 }
0x131f   :  { %v2379_v18 = vrot.slane %v1407_v15, %v2346_v62  ;;  %v1230_v32 = vrot.slane %v1720_v8, %v2357_v11 }
0x1321   :  { %v1728_v6 = vpack.i.b16 %v2379_v18, %v2379_v18  ;;  %v1416_v2 = vunpack.i.h.s16 %v2379_v18 }
0x1323   :  { %v1425_v26 = vrot.slane %v1728_v6, %v2357_v11 }
0x138f   :  { %v1459_v47 = vpop.permute.xlu0 %1458 }
0x1390   :  { %1902 = vmatmul.mubr.msk.bf16.vlgmr.msra.gmra.mrb[28].mxu0 %vm92_vm2, %v1459_v47  ;;  %vm853_vm2 = vsmask.f32 7942 }
0x1391   :  { %vm2466_vm4 = vmand %vm657_vm6, %vm853_vm2 }
0x1463   :  { %v1509_v0 = vpop.f32.mrb[28].mxu0 }
0x1464   :  { %v1565_v48 = vadd.f32 %v1564_v43, %v1509_v0  ;;  %v1903_v49 = vpop.f32.mrb[29].mxu0  ;;  %v660_v43 = vld [vmem:[#allocation10] sm:$0x2]  ;;  %v1051_v0 = vld [vmem:[#allocation10] sm:$0x4] }
0x1465   :  { %v1512_v50 = vpop.f32.mrb[30].mxu0 }
0x1466   :  { %v1570_v51 = vadd.f32 %v2221_v9, %v1565_v48  ;;  %v1904_v52 = vpop.f32.mrb[31].mxu0  ;;  %v234_v9 = vrot.slane %v2235_v39, %v2346_v62  ;;  %v634_v50 = vunpack.i.h.s16 %v2360_v12 }
0x1468   :  { %2015 = vtanh.f32 %v1570_v51  ;;  %v1735_v54 = vmul.f32 -1.442695, %v1570_v51  ;;  %v2351_v3 = vrot.slane %v234_v9, %v2346_v62  ;;  %v636_v57 = vpack.i.b16 %v634_v50, %v634_v50 }
0x146a   :  { %2017 = vpow2.f32 %v1735_v54  ;;  %v1680_v14 = vpack.i.b16 %v2351_v3, %v2351_v3  ;;  %v243_v45 = vunpack.i.h.s16 %v2351_v3  ;;  %v1442_v54 = vld [vmem:[#allocation10] sm:$0x8]  ;;  %v650_v1 = vrot.slane %v636_v57, %v2357_v11 }
0x146c   :  { %v252_v16 = vrot.slane %v1680_v14, %v2357_v11  ;;  %v245_v49 = vpack.i.b16 %v243_v45, %v243_v45  ;;  %v439_v14 = vunpack.i.h.s16 %v2386_v21 }
0x146e   :  { %v259_v56 = vrot.slane %v245_v49, %v2357_v11  ;;  %v441_v18 = vpack.i.b16 %v439_v14, %v439_v14 }
0x1470   :  { %v455_v21 = vrot.slane %v441_v18, %v2357_v11 }
0x1472   :  { %v2016_v53 = vpop.eup %2015 }
0x1473   :  { %1580 = vrot.lane.b32.xlu1 %v2016_v53, %s2118_s25 }
0x1474   :  { %v2018_v58 = vpop.eup %2017 }
0x1475   :  { %v1574_v61 = vadd.f32 1.0, %v2018_v58  ;;  %v1025_v58 = vunpack.i.h.s16 %v2369_v37 }
0x1477   :  { %2019 = vrcp.f32 %v1574_v61  ;;  %v1027_v9 = vpack.i.b16 %v1025_v58, %v1025_v58 }
0x1479   :  { %v1041_v13 = vrot.slane %v1027_v9, %v2357_v11 }
0x1481   :  { %v2355_v7 = vpop.eup %2019 }
0x1482   :  { %v1578_v33 = vmul.f32 %v2355_v7, %v2335_v30 }
0x14e5   :  { %v1581_v10 = vpop.permute.xlu1 %1580 }
0x14e6   :  { %v1583_v39 = vmul.f32 %v2355_v7, %v1581_v10 }
0x14e8   :  { %1585 = vrot.lane.b32.xlu0 %v1583_v39, %s2126_s30  ;;  %v1418_v39 = vpack.i.b16 %v1416_v2, %v1416_v2 }
0x14ea   :  { %v1432_v38 = vrot.slane %v1418_v39, %v2357_v11 }
0x14ec   :  { %260 = vrot.lane.b32.xlu0 %v252_v16, %s2126_s30 }
0x14f0   :  { %651 = vrot.lane.b32.xlu0 %v643_v19, %s2126_s30  ;;  %v830_v19 = vunpack.i.h.s16 %v2395_v24 }
0x14f2   :  { %v832_v22 = vpack.i.b16 %v830_v19, %v830_v19 }
0x14f4   :  { %1042 = vrot.lane.b32.xlu0 %v1034_v23, %s2126_s30  ;;  %v1221_v23 = vunpack.i.h.s16 %v2404_v5  ;;  %v846_v6 = vrot.slane %v832_v22, %v2357_v11 }
0x14f6   :  { %v1223_v25 = vpack.i.b16 %v1221_v23, %v1221_v23 }
0x14f8   :  { %1433 = vrot.lane.b32.xlu0 %v1425_v26, %s2126_s30  ;;  %v1237_v24 = vrot.slane %v1223_v25, %v2357_v11 }
0x14fc   :  { %456 = vrot.lane.b32.xlu0 %v448_v28, %s2126_s30  ;;  %v272_v28 = vld [vmem:[#allocation10 + $0x4] sm:$0x1] }
0x1500   :  { %847 = vrot.lane.b32.xlu0 %v839_v31, %s2126_s30 }
0x1504   :  { %1238 = vrot.lane.b32.xlu0 %v1230_v32, %s2126_s30  ;;  %v663_v32 = vld [vmem:[#allocation10 + $0x4] sm:$0x2] }
0x155a   :  { %v1586_v34 = vpop.permute.xlu0 %1585 }
0x155b   :  { %v2418_v35 = vadd.f32 %v1586_v34, %v1578_v33 }
0x155d   :  { %2021 = vtanh.f32 %v2418_v35 }
0x155e   :  { %v261_v41 = vpop.permute.xlu0 %260 }
0x155f   :  { %v270_v42 = vsel %vm2421_vm5, %v261_v41, %v269_v40 }
0x1560   :  { %271 = vst [vmem:[#allocation10] sm:$0x1] %v270_v42 }
0x1562   :  { %v652_v44 = vpop.permute.xlu0 %651 }
0x1563   :  { %v661_v46 = vsel %vm2429_vm8, %v652_v44, %v660_v43 }
0x1564   :  { %662 = vst [vmem:[#allocation10] sm:$0x2] %v661_v46 }
0x1566   :  { %v1043_v48 = vpop.permute.xlu0 %1042 }
0x1567   :  { %v2022_v51 = vpop.eup %2021  ;;  %v1052_v52 = vsel %vm2437_vm11, %v1043_v48, %v1051_v0  ;;  %v464_v61 = vld [vmem:[#allocation10] sm:$0x1] }
0x1568   :  { %1053 = vst [vmem:[#allocation10] sm:$0x4] %v1052_v52  ;;  %1591 = vrot.lane.b32.xlu1 %v2022_v51, %s2118_s25 }
0x156a   :  { %v1434_v55 = vpop.permute.xlu0 %1433 }
0x156b   :  { %v1443_v59 = vsel %vm2446_vm14, %v1434_v55, %v1442_v54  ;;  %v855_v10 = vld [vmem:[#allocation10] sm:$0x2] }
0x156c   :  { %1444 = vst [vmem:[#allocation10] sm:$0x8] %v1443_v59  ;;  %262 = vrot.lane.b32.xlu1 %v259_v56, %s2126_s30 }
0x156e   :  { %v457_v63 = vpop.permute.xlu0 %456 }
0x156f   :  { %v465_v3 = vsel %vm2456_vm1, %v457_v63, %v464_v61  ;;  %v1246_v16 = vld [vmem:[#allocation10] sm:$0x4] }
0x1570   :  { %466 = vst [vmem:[#allocation10] sm:$0x1] %v465_v3  ;;  %653 = vrot.lane.b32.xlu1 %v650_v1, %s2126_s30 }
0x1572   :  { %v848_v12 = vpop.permute.xlu0 %847 }
0x1573   :  { %v856_v37 = vsel %vm2466_vm4, %v848_v12, %v855_v10 }
0x1574   :  { %857 = vst [vmem:[#allocation10] sm:$0x2] %v856_v37  ;;  %1044 = vrot.lane.b32.xlu1 %v1041_v13, %s2126_s30 }
0x1576   :  { %v1239_v17 = vpop.permute.xlu0 %1238 }
0x1577   :  { %v1247_v20 = vsel %vm2476_vm7, %v1239_v17, %v1246_v16 }
0x1578   :  { %1248 = vst [vmem:[#allocation10] sm:$0x4] %v1247_v20  ;;  %1435 = vrot.lane.b32.xlu1 %v1432_v38, %s2126_s30 }
0x157c   :  { %458 = vrot.lane.b32.xlu1 %v455_v21, %s2126_s30 }
0x1580   :  { %849 = vrot.lane.b32.xlu1 %v846_v6, %s2126_s30 }
0x1584   :  { %1240 = vrot.lane.b32.xlu1 %v1237_v24, %s2126_s30 }
0x15da   :  { %v1592_v26 = vpop.permute.xlu1 %1591 }
0x15db   :  { %v1594_v27 = vmul.f32 %v2355_v7, %v1592_v26  ;;  %v1054_v7 = vld [vmem:[#allocation10 + $0x4] sm:$0x4] }
0x15dd   :  { %v1595_v29 = vpack.c.bf16 %v1594_v27, %v1594_v27 }
0x15de   :  { %v263_v31 = vpop.permute.xlu1 %262 }
0x15df   :  { %v1603_v8 = vrot.slane %v1595_v29, %v2346_v62  ;;  %v273_v5 = vsel %vm2421_vm5, %v263_v31, %v272_v28  ;;  %vm1635_vm5 = vsmask.f32 7950 }
0x15e0   :  { %274 = vst [vmem:[#allocation10 + $0x4] sm:$0x1] %v273_v5  ;;  %vm1636_vm6 = vmand %vm1439_vm12, %vm1635_vm5 }
0x15e1   :  { %v1610_v33 = vrot.slane %v1603_v8, %v2346_v62  ;;  %v1445_v62 = vld [vmem:[#allocation10 + $0x4] sm:$0x8] }
0x15e2   :  { %v654_v34 = vpop.permute.xlu1 %653 }
0x15e3   :  { %v664_v40 = vsel %vm2429_vm8, %v654_v34, %v663_v32  ;;  %v1736_v41 = vpack.i.b16 %v1610_v33, %v1610_v33  ;;  %v1612_v42 = vunpack.i.h.s16 %v1610_v33 }
0x15e4   :  { %665 = vst [vmem:[#allocation10 + $0x4] sm:$0x2] %v664_v40 }
0x15e5   :  { %v1621_v43 = vrot.slane %v1736_v41, %v2357_v11  ;;  %v1614_v44 = vpack.i.b16 %v1612_v42, %v1612_v42 }
0x15e6   :  { %v1045_v45 = vpop.permute.xlu1 %1044 }
0x15e7   :  { %v1055_v36 = vsel %vm2437_vm11, %v1045_v45, %v1054_v7  ;;  %1629 = vrot.lane.b32.xlu0 %v1621_v43, %s2126_s30  ;;  %v1628_v46 = vrot.slane %v1614_v44, %v2357_v11  ;;  %v467_v47 = vld [vmem:[#allocation10 + $0x4] sm:$0x1] }
0x15e8   :  { %1056 = vst [vmem:[#allocation10 + $0x4] sm:$0x4] %v1055_v36 }
0x15e9   :  { %1631 = vrot.lane.b32.xlu1 %v1628_v46, %s2126_s30 }
0x15ea   :  { %v1436_v30 = vpop.permute.xlu1 %1435 }
0x15eb   :  { %v1446_v0 = vsel %vm2446_vm14, %v1436_v30, %v1445_v62  ;;  %1644 = vrot.lane.b32.xlu0 %v1594_v27, %s2126_s30  ;;  %v858_v11 = vld [vmem:[#allocation10 + $0x4] sm:$0x2] }
0x15ec   :  { %1447 = vst [vmem:[#allocation10 + $0x4] sm:$0x8] %v1446_v0 }
0x15ed   :  { %1650 = vrot.lane.b32.xlu1 %v2418_v35, %s2129_s3  ;;  %v1637_v35 = vld [vmem:[#allocation10] sm:$0x8] }
0x15ee   :  { %v459_v48 = vpop.permute.xlu1 %458 }
0x15ef   :  { %v468_v49 = vsel %vm2456_vm1, %v459_v48, %v467_v47  ;;  %v1249_v52 = vld [vmem:[#allocation10 + $0x4] sm:$0x4] }
0x15f0   :  { %469 = vst [vmem:[#allocation10 + $0x4] sm:$0x1] %v468_v49 }
0x15f2   :  { %v850_v50 = vpop.permute.xlu1 %849 }
0x15f3   :  { %v859_v51 = vsel %vm2466_vm4, %v850_v50, %v858_v11  ;;  %v1640_v57 = vld [vmem:[#allocation10 + $0x4] sm:$0x8] }
0x15f4   :  { %860 = vst [vmem:[#allocation10 + $0x4] sm:$0x2] %v859_v51 }
0x15f6   :  { %v1241_v53 = vpop.permute.xlu1 %1240 }
0x15f7   :  { %v1250_v54 = vsel %vm2476_vm7, %v1241_v53, %v1249_v52 }
0x15f8   :  { %1251 = vst [vmem:[#allocation10 + $0x4] sm:$0x4] %v1250_v54 }
0x1659   :  { %v1630_v55 = vpop.permute.xlu0 %1629 }
0x165a   :  { %v1638_v56 = vsel %vm1636_vm6, %v1630_v55, %v1637_v35 }
0x165b   :  { %1639 = vst [vmem:[#allocation10] sm:$0x8] %v1638_v56  ;;  %v1632_v58 = vpop.permute.xlu1 %1631 }
0x165c   :  { %v1641_v59 = vsel %vm1636_vm6, %v1632_v58, %v1640_v57 }
0x165d   :  { %1642 = vst [vmem:[#allocation10 + $0x4] sm:$0x8] %v1641_v59  ;;  %v1645_v60 = vpop.permute.xlu0 %1644 }
0x165e   :  { %1648 = vst.msk [vmem:[#allocation2] sm:$0x3] %vm64_vm0, %v1645_v60 }
0x165f   :  { %2100 = shalt.err (!%p2097_p0)
}
0x1660   :  { %s2101_s10 = scalar_lea.hbm %s2537_s4, 128 }
0x1661   :  { %p2102_p1 = scmp.ne.s32.totalorder %s2537_s4, %s2101_s10  ;;  %p2105_p2 = scmp.lt.u32.totalorder %s2101_s10, %s2537_s4 }
0x1663   :  { %p2107_p3 = pnand %p2105_p2, %p2102_p1 }
0x1665   :  { %2110 = shalt.err (!%p2107_p3)
}
0x1666   :  { %1665 = dma.vmem_to_hbm [thread:$0]  %s1660_s6, 128, %s2537_s4, [#allocation6], %s2118_s25, %s2118_s25, %s2119_s26   ;;  %v1651_v61 = vpop.permute.xlu1 %1650 }
0x1667   :  { %1653 = vst.msk [vmem:[#allocation3] sm:$0x3] %vm64_vm0, %v1651_v61 }
0x1668   :  { %2115 = dma.done.wait [#allocation6], 128  }
0x1669   :  { %2116 = vsyncadd [#allocation6], 4294967168 }
0x166a   :  { %1669 = vsyncpa [#allocation5], 1 }
0x166b   :  { %1670 = vsyncpa [#allocation8], 1 }
0x166c   :  { %1671 = vsyncpa [#allocation6], 1 }

</bundles_post_ra>
